<compile_context>
chip_gen: v5e
topology: v5e:2x2
jax: 0.10.0
libtpu: 0.0.40
codegen_flags: <defaults>
</compile_context>

<pallas_src>
import jax
import jax.numpy as jnp
from jax.experimental import pallas as pl
from jax.experimental.pallas import tpu as pltpu


# ----------------------------- kernels ------------------------------------


def gemm_bias_relu_kernel(x_ref, w_ref, b_ref, o_ref, acc_ref):
    """o = relu(x @ w + b), accumulated over the K grid axis (axis 1)."""
    k = pl.program_id(1)

    @pl.when(k == 0)
    def _zero():
        acc_ref[...] = jnp.zeros_like(acc_ref)

    acc_ref[...] += jnp.dot(x_ref[...], w_ref[...],
                            preferred_element_type=jnp.float32)

    @pl.when(k == pl.num_programs(1) - 1)
    def _finalize():
        # bias + ReLU applied once at the end of the K reduction.
        o_ref[...] = jnp.maximum(acc_ref[...] + b_ref[...],
                                 0.0).astype(o_ref.dtype)


def gemm23_kernel(h1_ref, w2_ref, b2_ref, w3_ref, b3_ref, o_ref, acc_ref):
    """o = relu(h1 @ w2 + b2) @ w3 + b3, K-reduction over h1's feature dim.

    W2 is streamed in (tk2, H2) tiles along the K grid axis; only the small
    W3 / biases stay resident. The finalize GEMM3 is cheaper than one K step,
    so there is no pipeline bubble to hide.
    """
    k = pl.program_id(1)

    @pl.when(k == 0)
    def _zero():
        acc_ref[...] = jnp.zeros_like(acc_ref)

    acc_ref[...] += jnp.dot(h1_ref[...], w2_ref[...],
                            preferred_element_type=jnp.float32)

    @pl.when(k == pl.num_programs(1) - 1)
    def _finalize():
        # bias + ReLU written back into the accumulator in place (no extra
        # (tb, H2) f32 temporary alive next to the accumulator).
        acc_ref[...] = jnp.maximum(acc_ref[...] + b2_ref[...], 0.0)
        out = jnp.dot(acc_ref[...].astype(w3_ref.dtype), w3_ref[...],
                      preferred_element_type=jnp.float32) + b3_ref[...]
        o_ref[...] = out.astype(o_ref.dtype)


# ----------------------------- helpers -------------------------------------


def _round_up(n, m):
    return ((n + m - 1) // m) * m


def _pick_tile(dim_pad, max_tile):
    """Largest multiple of 128 that divides dim_pad and is <= max_tile."""
    best = 128
    t = 128
    while t <= min(max_tile, dim_pad):
        if dim_pad % t == 0:
            best = t
        t += 128
    return best


def _vmem_limit_bytes(default_cap=64 * 1024 * 1024):
    """Generation-aware VMEM request: physical - 16 MiB headroom, <= 112 MiB."""
    cap = default_cap
    try:
        info = pltpu.get_tpu_info()
        cap = int(getattr(info, "vmem_capacity_bytes", default_cap))
    except Exception:  # hardware query unavailable: conservative default
        pass
    return max(32 * 1024 * 1024,
               min(cap - 16 * 1024 * 1024, 112 * 1024 * 1024))


def prepare_fc_block_params(w1, b1, w2, b2, w3, b3, *,
                            weight_dtype=jnp.bfloat16):
    """One-time, model-load-time weight prep (do NOT run per inference step).

    Takes torch-layout weights w_i of shape (out_features, in_features) and
    biases (out_features,). Transposes to (in, out), zero-pads every dim to a
    multiple of 128 (lane-dense), and casts weights to the MXU feed dtype.
    Biases stay f32 (added to the f32 accumulator in the finalize).
    """
    w1 = jnp.asarray(w1).T
    w2 = jnp.asarray(w2).T
    w3 = jnp.asarray(w3).T
    F, H1 = w1.shape
    H1b, H2 = w2.shape
    H2b, C = w3.shape
    assert H1 == H1b and H2 == H2b, "inconsistent weight shapes"

    F_p, H1_p, H2_p, C_p = (_round_up(d, 128) for d in (F, H1, H2, C))

    def pad_w(w, rows, cols):
        w = w.astype(weight_dtype)
        if w.shape == (rows, cols):
            return w
        return jnp.zeros((rows, cols), weight_dtype).at[:w.shape[0],
                                                        :w.shape[1]].set(w)

    def pad_b(b, cols):
        b = jnp.asarray(b, jnp.float32).reshape(1, -1)
        if b.shape[1] == cols:
            return b
        return jnp.zeros((1, cols), jnp.float32).at[:, :b.shape[1]].set(b)

    return {
        "w1": pad_w(w1, F_p, H1_p), "b1": pad_b(b1, H1_p),
        "w2": pad_w(w2, H1_p, H2_p), "b2": pad_b(b2, H2_p),
        "w3": pad_w(w3, H2_p, C_p), "b3": pad_b(b3, C_p),
        "dims": (F, H1, H2, C),          # logical (unpadded) sizes
        "weight_dtype": weight_dtype,
    }


# ----------------------------- wrapper --------------------------------------


def fc_block(x, params, *, tile_b=256, tile_k1=1024, tile_k2=512):
    """AlexNet FcBlock head: relu(x@W1+b1) -> relu(.@W2+b2) -> .@W3+b3.

    x: (B, in_channels) float32. params: output of prepare_fc_block_params.
    Dropout layers are identity (inference semantics).
    """
    F, H1, H2, C = params["dims"]
    w1, b1 = params["w1"], params["b1"]
    w2, b2 = params["w2"], params["b2"]
    w3, b3 = params["w3"], params["b3"]
    weight_dtype = params["weight_dtype"]
    out_dtype = x.dtype

    B = x.shape[0]
    F_p, H1_p = w1.shape
    _, H2_p = w2.shape
    _, C_p = w3.shape

    # Batch tile: multiple of 8; force >= 2 batch tiles whenever the batch
    # allows so the "parallel" axis shards across megacore / v7x's two TCs.
    tb = min(tile_b, _round_up(B, 8))
    if B > 8 and _round_up(B, tb) // tb < 2:
        tb = _round_up((B + 1) // 2, 8)
    B_p = _round_up(B, tb)
    n_bt = B_p // tb

    tk1 = _pick_tile(F_p, tile_k1)    # K tile for GEMM1 (over in_features)
    tk2 = _pick_tile(H1_p, tile_k2)   # K tile for GEMM2 (over 4096)

    # Per-call input cast/pad only (weights were prepared at load time).
    if (B_p, F_p) == x.shape:
        x_p = x.astype(weight_dtype)
    else:
        x_p = jnp.zeros((B_p, F_p), weight_dtype).at[:B, :F].set(
            x.astype(weight_dtype))

    vmem_limit = _vmem_limit_bytes()
    wsz = jnp.dtype(weight_dtype).itemsize

    # ---- kernel 1: h1 = relu(x @ W1 + b1) ---------------------------------
    flops1 = 2 * B_p * F_p * H1_p
    bytes1 = (x_p.size * wsz + w1.size * wsz * n_bt + b1.size * 4
              + B_p * H1_p * wsz)
    h1 = pl.pallas_call(
        gemm_bias_relu_kernel,
        out_shape=jax.ShapeDtypeStruct((B_p, H1_p), weight_dtype),
        grid_spec=pltpu.PrefetchScalarGridSpec(
            num_scalar_prefetch=0,
            grid=(n_bt, F_p // tk1),
            in_specs=[
                pl.BlockSpec((tb, tk1), lambda i, k: (i, k)),
                pl.BlockSpec((tk1, H1_p), lambda i, k: (k, 0)),
                pl.BlockSpec((1, H1_p), lambda i, k: (0, 0)),
            ],
            out_specs=pl.BlockSpec((tb, H1_p), lambda i, k: (i, 0)),
            scratch_shapes=[pltpu.VMEM((tb, H1_p), jnp.float32)],
        ),
        compiler_params=pltpu.CompilerParams(
            dimension_semantics=("parallel", "arbitrary"),
            vmem_limit_bytes=vmem_limit,
        ),
        cost_estimate=pl.CostEstimate(
            flops=flops1, transcendentals=0, bytes_accessed=bytes1),
    )(x_p, w1, b1)

    # ---- kernel 2: out = relu(h1 @ W2 + b2) @ W3 + b3 ---------------------
    flops2 = 2 * B_p * (H1_p * H2_p + H2_p * C_p)
    bytes2 = (h1.size * wsz + w2.size * wsz * n_bt + w3.size * wsz
              + (b2.size + b3.size) * 4
              + B_p * C_p * jnp.dtype(out_dtype).itemsize)
    out = pl.pallas_call(
        gemm23_kernel,
        out_shape=jax.ShapeDtypeStruct((B_p, C_p), out_dtype),
        grid_spec=pltpu.PrefetchScalarGridSpec(
            num_scalar_prefetch=0,
            grid=(n_bt, H1_p // tk2),
            in_specs=[
                pl.BlockSpec((tb, tk2), lambda i, k: (i, k)),
                pl.BlockSpec((tk2, H2_p), lambda i, k: (k, 0)),   # W2 streamed
                pl.BlockSpec((1, H2_p), lambda i, k: (0, 0)),
                pl.BlockSpec((H2_p, C_p), lambda i, k: (0, 0)),   # small, ~1 MiB
                pl.BlockSpec((1, C_p), lambda i, k: (0, 0)),
            ],
            out_specs=pl.BlockSpec((tb, C_p), lambda i, k: (i, 0)),
            scratch_shapes=[pltpu.VMEM((tb, H2_p), jnp.float32)],
        ),
        compiler_params=pltpu.CompilerParams(
            dimension_semantics=("parallel", "arbitrary"),
            vmem_limit_bytes=vmem_limit,
        ),
        cost_estimate=pl.CostEstimate(
            flops=flops2, transcendentals=0, bytes_accessed=bytes2),
    )(h1, w2, b2, w3, b3)

    return out[:B, :C]


# ----------------------------- reference ------------------------------------


def fc_block_ref(x, w1, b1, w2, b2, w3, b3, weight_dtype=jnp.bfloat16):
    """Pure-JAX reference with torch-layout (out, in) weights; mirrors the
    kernel's bf16 MXU feeds / f32 accumulation."""
    wd = weight_dtype
    b1 = jnp.asarray(b1, jnp.float32).reshape(1, -1)
    b2 = jnp.asarray(b2, jnp.float32).reshape(1, -1)
    b3 = jnp.asarray(b3, jnp.float32).reshape(1, -1)
    h1 = jnp.maximum(
        jnp.dot(x.astype(wd), jnp.asarray(w1).T.astype(wd),
                preferred_element_type=jnp.float32) + b1, 0.0)
    h2 = jnp.maximum(
        jnp.dot(h1.astype(wd), jnp.asarray(w2).T.astype(wd),
                preferred_element_type=jnp.float32) + b2, 0.0)
    return (jnp.dot(h2.astype(wd), jnp.asarray(w3).T.astype(wd),
                    preferred_element_type=jnp.float32) + b3)


# ----------------------------- demo ------------------------------------------


if __name__ == "__main__":
    # Small shapes consistent with FcBlock(in_channels, num_classes=12):
    # in_channels -> 4096 -> 4096 -> 12, with 4096 scaled down to 512.
    B = 256   # 2 batch tiles -> both TCs / megacore get work
    F = 384   # in_channels
    H = 512   # hidden (stands in for 4096)
    C = 12    # num_classes (padded to 128 inside the prepared weights)

    key = jax.random.PRNGKey(0)
    k_x, k_w1, k_b1, k_w2, k_b2, k_w3, k_b3 = jax.random.split(key, 7)

    x = jax.random.normal(k_x, (B, F), dtype=jnp.float32)
    # torch-layout weights: (out_features, in_features), roughly Kaiming scale.
    w1 = jax.random.normal(k_w1, (H, F), jnp.float32) * (1.0 / jnp.sqrt(F))
    b1 = jax.random.normal(k_b1, (H,), jnp.float32) * 0.01
    w2 = jax.random.normal(k_w2, (H, H), jnp.float32) * (1.0 / jnp.sqrt(H))
    b2 = jax.random.normal(k_b2, (H,), jnp.float32) * 0.01
    w3 = jax.random.normal(k_w3, (C, H), jnp.float32) * (1.0 / jnp.sqrt(H))
    b3 = jax.random.normal(k_b3, (C,), jnp.float32) * 0.01

    # One-time weight prep (transpose + pad + bf16 cast), then the kernel call.
    params = prepare_fc_block_params(w1, b1, w2, b2, w3, b3)
    out = fc_block(x, params, tile_b=256, tile_k1=1024, tile_k2=512)
    out = jax.block_until_ready(out)

    ref = fc_block_ref(x, w1, b1, w2, b2, w3, b3)
    assert out.shape == (B, C), out.shape
    max_err = float(jnp.max(jnp.abs(out - ref)))
    assert jnp.allclose(out, ref, atol=2e-2, rtol=2e-2), (
        f"mismatch vs reference, max abs err={max_err}")

    print("KERNEL_OK")
</pallas_src>

<mosaic_0001>
module attributes {stable_mosaic.version = 11 : i64} {
  func.func @gemm_bias_relu_kernel(%arg0: i32, %arg1: i32, %arg2: memref<128x384xbf16, #tpu.memory_space<vmem>>, %arg3: memref<384x512xbf16, #tpu.memory_space<vmem>>, %arg4: memref<1x512xf32, #tpu.memory_space<vmem>>, %arg5: memref<128x512xbf16, #tpu.memory_space<vmem>>, %arg6: memref<128x512xf32, #tpu.memory_space<vmem>>) attributes {dimension_semantics = [#tpu.dimension_semantics<parallel>, #tpu.dimension_semantics<arbitrary>], iteration_bounds = array<i64: 2, 1>, scalar_prefetch = 0 : i64, scratch_operands = 1 : i64, tpu.core_type = #tpu.core_type<tc>, window_params = [{transform_indices = @transform_0, window_bounds = array<i64: 128, 384>}, {transform_indices = @transform_1, window_bounds = array<i64: 384, 512>}, {pipeline_mode = #tpu.pipeline_mode<synchronous>, transform_indices = @transform_2, window_bounds = array<i64: 1, 512>}, {transform_indices = @transform_3, window_bounds = array<i64: 128, 512>}]} {
    %c0_i32 = arith.constant 0 : i32
    %0 = arith.cmpi eq, %arg1, %c0_i32 : i32
    %1 = arith.extui %0 : i1 to i32
    %c0_i32_0 = arith.constant 0 : i32
    %2 = arith.cmpi ne, %1, %c0_i32_0 : i32
    scf.if %2 {
      %cst_10 = arith.constant 0.000000e+00 : f32
      %12 = vector.broadcast %cst_10 : f32 to vector<128x512xf32>
      %c0_11 = arith.constant 0 : index
      %c0_12 = arith.constant 0 : index
      %13 = vector.load %arg6[%c0_11, %c0_12] : memref<128x512xf32, #tpu.memory_space<vmem>>, vector<128x512xf32>
      tpu.vector_store %arg6[%c0_11, %c0_12], %12 {strides = array<i32>} : memref<128x512xf32, #tpu.memory_space<vmem>>, vector<128x512xf32>,
    } else {
    }
    %c0 = arith.constant 0 : index
    %c0_1 = arith.constant 0 : index
    %3 = vector.load %arg6[%c0, %c0_1] : memref<128x512xf32, #tpu.memory_space<vmem>>, vector<128x512xf32>
    %c0_2 = arith.constant 0 : index
    %c0_3 = arith.constant 0 : index
    %4 = vector.load %arg2[%c0_2, %c0_3] : memref<128x384xbf16, #tpu.memory_space<vmem>>, vector<128x384xbf16>
    %c0_4 = arith.constant 0 : index
    %c0_5 = arith.constant 0 : index
    %5 = vector.load %arg3[%c0_4, %c0_5] : memref<384x512xbf16, #tpu.memory_space<vmem>>, vector<384x512xbf16>
    %cst = arith.constant dense<0.000000e+00> : vector<128x512xf32>
    %6 = tpu.matmul %4, %5, %cst {dimension_numbers = #tpu.dot_dimension_numbers<[1], [0], [0], [1], [0, 0, 1, 1], [], []>} : vector<128x384xbf16>, vector<384x512xbf16>, vector<128x512xf32> -> vector<128x512xf32>
    %7 = arith.addf %3, %6 : vector<128x512xf32>
    %c0_6 = arith.constant 0 : index
    %c0_7 = arith.constant 0 : index
    %8 = vector.load %arg6[%c0_6, %c0_7] : memref<128x512xf32, #tpu.memory_space<vmem>>, vector<128x512xf32>
    tpu.vector_store %arg6[%c0_6, %c0_7], %7 {strides = array<i32>} : memref<128x512xf32, #tpu.memory_space<vmem>>, vector<128x512xf32>,
    %c0_i32_8 = arith.constant 0 : i32
    %9 = arith.cmpi eq, %arg1, %c0_i32_8 : i32
    %10 = arith.extui %9 : i1 to i32
    %c0_i32_9 = arith.constant 0 : i32
    %11 = arith.cmpi ne, %10, %c0_i32_9 : i32
    scf.if %11 {
      %c0_10 = arith.constant 0 : index
      %c0_11 = arith.constant 0 : index
      %12 = vector.load %arg6[%c0_10, %c0_11] : memref<128x512xf32, #tpu.memory_space<vmem>>, vector<128x512xf32>
      %c0_12 = arith.constant 0 : index
      %c0_13 = arith.constant 0 : index
      %13 = vector.load %arg4[%c0_12, %c0_13] : memref<1x512xf32, #tpu.memory_space<vmem>>, vector<1x512xf32>
      %14 = vector.broadcast %13 : vector<1x512xf32> to vector<128x512xf32>
      %15 = arith.addf %12, %14 : vector<128x512xf32>
      %cst_14 = arith.constant 0.000000e+00 : f32
      %16 = vector.broadcast %cst_14 : f32 to vector<128x512xf32>
      %17 = arith.maximumf %15, %16 : vector<128x512xf32>
      %18 = arith.truncf %17 : vector<128x512xf32> to vector<128x512xbf16>
      %c0_15 = arith.constant 0 : index
      %c0_16 = arith.constant 0 : index
      %19 = vector.load %arg5[%c0_15, %c0_16] : memref<128x512xbf16, #tpu.memory_space<vmem>>, vector<128x512xbf16>
      tpu.vector_store %arg5[%c0_15, %c0_16], %18 {strides = array<i32>} : memref<128x512xbf16, #tpu.memory_space<vmem>>, vector<128x512xbf16>,
    } else {
    }
    return
  }
  func.func @transform_0(%arg0: i32, %arg1: i32) -> (i32, i32) {
    %c0_i32 = arith.constant 0 : i32
    return %arg0, %arg1 : i32, i32
  }
  func.func @transform_1(%arg0: i32, %arg1: i32) -> (i32, i32) {
    %c0_i32 = arith.constant 0 : i32
    %c0_i32_0 = arith.constant 0 : i32
    return %arg1, %c0_i32 : i32, i32
  }
  func.func @transform_2(%arg0: i32, %arg1: i32) -> (i32, i32) {
    %c0_i32 = arith.constant 0 : i32
    %c0_i32_0 = arith.constant 0 : i32
    %c0_i32_1 = arith.constant 0 : i32
    return %c0_i32, %c0_i32_0 : i32, i32
  }
  func.func @transform_3(%arg0: i32, %arg1: i32) -> (i32, i32) {
    %c0_i32 = arith.constant 0 : i32
    %c0_i32_0 = arith.constant 0 : i32
    return %arg0, %c0_i32 : i32, i32
  }
}

</mosaic_0001>

<bundles_post_ra>
// kernel: tpu_custom_call.1
= control target key start
LH: loop header
LB: loop body
LE: loop exit
PB: predicated region body
PF: predicated region fallthrough
CT: control target
= control target key end

     0   :  { %8 = vsyncpa [#allocation4], 0  ;;  %s3744_s0 = inlined_call_operand.hbm [shape: bf16[256,384], index: 0, kind: input, shape index: {}]   ;;  %s3745_s1 = inlined_call_operand.hbm [shape: bf16[384,512], index: 1, kind: input, shape index: {}]   ;;  %s3746_s2 = inlined_call_operand.hbm [shape: f32[1,512], index: 2, kind: input, shape index: {}]   ;;  %s3747_s3 = inlined_call_operand.hbm [shape: bf16[256,512], index: 3, kind: output, shape index: {}]  }
   0x1   :  { %10 = vsyncpa [#allocation4 + $0x1], 0 }
   0x2   :  { %11 = vsyncpa [#allocation7], 0 }
   0x3   :  { %12 = vsyncpa [#allocation5], 0 }
   0x4   :  { %14 = vsyncpa [#allocation5 + $0x1], 0  ;;  %s3146_s12 = smov 0   ;;  %s3148_s13 = smov 0  }
   0x5   :  { %s3150_s14 = smov 0   ;;  %s3152_s15 = smov 0  }
   0x6   :  { %s3154_s16 = smov 0   ;;  %s3156_s17 = smov 0  }
   0x7 LB: > { %s2227_s18 = sadd.s32 4294967295, %s3116_s17   ;;  %s2228_s19 = sadd.s32 4294967294, %s3116_s17   ;;  %s3116_s17 = sphi %s3156_s17, %s20_s17   ;;  %s3112_s16 = sphi %s3154_s16, %s3776_s16   ;;  %s3108_s15 = sphi %s3152_s15, %s3775_s15   ;;  %s3104_s14 = sphi %s3150_s14, %s3774_s14   ;;  %s3100_s13 = sphi %s3148_s13, %s3773_s13   ;;  %s3096_s12 = sphi %s3146_s12, %s3772_s12  }
   0x8   : > { %p54_p0 = scmp.ne.s32.totalorder %s3100_s13, %s3096_s12  ;;  %p3180_p1 = scmp.eq.s32.totalorder %s2227_s18, 0 }
   0x9   : > { %p3184_p2 = scmp.eq.s32.totalorder %s2227_s18, 1  ;;  %p131_p3 = scmp.eq.s32.totalorder %s2228_s19, 1 }
   0xa   : > { %p3190_p4 = por %p3180_p1, %p54_p0  ;;  %p2229_p5 = scmp.ge.s32.totalorder %s3116_s17, 1 }
   0xb   : > { %p3195_p6 = por %p131_p3, %p54_p0  ;;  %p138_p7 = scmp.lt.s32.totalorder %s3116_s17, 3 }
   0xc   : > { %s153_s26 = sshll.u32 %s3745_s1, 4  ;;  %s3118_s28 = smov [#allocation6]   ;;  %s154_s26 = int_to_ptr.hbm [resolvable:$true] %s153_s26 }
   0xd   : > { %p3203_p8 = pnand %p2229_p5, %p138_p7  ;;  %s155_s29 = sshll.u32 %s3118_s28, 4  ;;  %s156_s29 = int_to_ptr.vmem [resolvable:$true] %s155_s29 }
   0xe   : > { %p2232_p11 = scmp.ge.s32.totalorder %s3116_s17, 2  ;;  %s168_s5 = sshll.u32 %s3746_s2, 4  ;;  %s169_s5 = int_to_ptr.hbm [resolvable:$true] %s168_s5 }
   0xf   : > { %p2863_p9 = pneg %p3203_p8  ;;  %s3119_s6 = smov 256  }
  0x10   : > { %s3120_s7 = smov 16   ;;  %s3121_s8 = smov [#allocation8]  }
  0x11   : > { %p2864_p10 = pnand %p2863_p9, %p3180_p1  ;;  %s170_s9 = sshll.u32 %s3121_s8, 4  ;;  %s171_s9 = int_to_ptr.vmem [resolvable:$true] %s170_s9 }
  0x12   : > { %s32_s10 = sadd.s32 1, %s3112_s16  ;;  %s41_s11 = sadd.s32 1, %s3104_s14 }
  0x13   : > { %2866 = dma.hbm_to_vmem [thread:$0]  (!%p2864_p10), %s154_s26, 12288, %s156_s29, [#allocation7], %s3119_s6, %s3119_s6, %s3120_s7  }
  0x14   : > { %2869 = dma.hbm_to_vmem [thread:$0]  (!%p2864_p10), %s169_s5, 64, %s171_s9, [#allocation7]  }
  0x15   : > { %p34_p12 = scmp.ge.s32.totalorder %s32_s10, 2  ;;  %p48_p13 = scmp.ne.s32.totalorder %s3104_s14, %s3100_s13 }
  0x16   : > { %p49_p0 = scmp.eq.s32.totalorder %s3116_s17, 0  ;;  %p2880_p3 = scmp.lt.s32.totalorder %s3116_s17, 2 }
  0x17   : > { %s3778_s10 = smov (%p34_p12, %s32_s10), 0  ;;  %p3225_p7 = por %p3184_p2, %p48_p13 }
  0x18   : > { %p50_p5 = por %p49_p0, %p48_p13  ;;  %s36_s19 = ssub.s32 %s3112_s16, %s3778_s10 }
  0x19   : > { %s181_s24 = sand.u32 1, %s3104_s14   ;;  %p39_p9 = scmp.eq.s32.totalorder %s36_s19, 0 }
  0x1a   : > { %s2848_s25 = smul.u32 192, %s181_s24  ;;  %p2871_p10 = pnand %p2880_p3, %p50_p5 }
  0x1b   : > { %s3233_s26 = scalar_select %p39_p9, %s3104_s14, %s41_s11  }
  0x1c   : > { %s2849_s28 = smul.u32 192, %s3112_s16  ;;  %s185_s29 = scalar_lea.vmem [#allocation3], %s2848_s25 }
  0x1d   : > { %s196_s30 = sshll.u32 %s185_s29, 4  ;;  %s182_s7 = scalar_lea.sflag [#allocation4], %s181_s24  ;;  %s197_s30 = int_to_ptr.vmem [resolvable:$true] %s196_s30 }
  0x1e   : > { %s193_s6 = scalar_lea.hbm %s3744_s0, %s2849_s28  ;;  %s3122_s8 = smov 192  }
  0x1f   : > { %s194_s21 = sshll.u32 %s193_s6, 4  ;;  %s3123_s9 = smov 12   ;;  %s195_s21 = int_to_ptr.hbm [resolvable:$true] %s194_s21 }
  0x20   : > { %2873 = dma.hbm_to_vmem [thread:$0]  (!%p2871_p10), %s195_s21, 3072, %s197_s30, %s182_s7, %s3122_s8, %s3122_s8, %s3123_s9  }
  0x21   : > { %208 = sbr.rel (%p3203_p8) target bundleno = 603 (0x25b), region = 32 }
  0x26   : > { %s3242_s11 = sand.u32 1, %s3100_s13  }
  0x27   : > { %s2850_s19 = smul.u32 192, %s3242_s11  ;;  %s211_s25 = scalar_lea.sflag [#allocation4], %s3242_s11 }
  0x29   : > { %s3246_s29 = scalar_lea.vmem [#allocation3], %s2850_s19 }
  0x2a   : > { %3083 = dma.done.wait (%p3190_p4), %s211_s25, 3072  }
  0x2b   : > { %3085 = vsyncadd (%p3190_p4), %s211_s25, 4294964224 }
  0x2c   : > { %3087 = dma.done.wait (%p3180_p1), [#allocation7], 12352  }
  0x2d   : > { %3089 = vsyncadd (%p3180_p1), [#allocation7], 4294954944  ;;  %v2450_v0 = vld [vmem:[#allocation6 + $0xe0] sm:$0xf]  ;;  %v2780_v1 = vld [vmem:[#allocation6 + $0xec] sm:$0xf0] }
  0x2e   : > { %v2578_v2 = vld [vmem:[#allocation6 + $0x1e0] sm:$0xf]  ;;  %v2451_v3 = vor.u32 %v2780_v1, %v2450_v0  ;;  %v2812_v4 = vld [vmem:[#allocation6 + $0x1ec] sm:$0xf0]  ;;  %v2778_v9 = vld [vmem:[#allocation6 + $0xe4] sm:$0xf] }
  0x2f   : > { %v2706_v5 = vld [vmem:[#allocation6 + $0x2e0] sm:$0xf]  ;;  %v2844_v6 = vld [vmem:[#allocation6 + $0x2ec] sm:$0xf0]  ;;  %v2579_v7 = vor.u32 %v2812_v4, %v2578_v2  ;;  %v2452_v10 = vld [vmem:[#allocation6 + $0xf0] sm:$0xf0] }
  0x30   : > { %v2707_v8 = vor.u32 %v2844_v6, %v2706_v5  ;;  %v2434_v11 = vld [vmem:[#allocation6 + $0xc0] sm:$0xf]  ;;  %1120 = vmatpush.bf16.msra.mxu0 %v2451_v3  ;;  %v2455_v12 = vor.u32 %v2778_v9, %v2452_v10  ;;  %v2776_v13 = vld [vmem:[#allocation6 + $0xcc] sm:$0xf0]  ;;  %v2774_v20 = vld [vmem:[#allocation6 + $0xc4] sm:$0xf] }
  0x31   : > { %v2562_v14 = vld [vmem:[#allocation6 + $0x1c0] sm:$0xf]  ;;  %v2808_v15 = vld [vmem:[#allocation6 + $0x1cc] sm:$0xf0]  ;;  %1169 = vmatpush.bf16.msra.mxu1 %v2579_v7  ;;  %v2435_v16 = vor.u32 %v2776_v13, %v2434_v11  ;;  %v2436_v22 = vld [vmem:[#allocation6 + $0xd0] sm:$0xf0] }
  0x32   : > { %1218 = vmatpush.bf16.msra.mxu2 %v2707_v8  ;;  %v2563_v17 = vor.u32 %v2808_v15, %v2562_v14  ;;  %v2690_v18 = vld [vmem:[#allocation6 + $0x2c0] sm:$0xf]  ;;  %v2840_v19 = vld [vmem:[#allocation6 + $0x2cc] sm:$0xf0]  ;;  %1267 = vmatpush.bf16.msra.mxu3 %v2455_v12  ;;  %v2439_v25 = vor.u32 %v2774_v20, %v2436_v22  ;;  %v2770_v31 = vld [vmem:[#allocation6 + $0xa4] sm:$0xf] }
  0x33   : > { %v2691_v21 = vor.u32 %v2840_v19, %v2690_v18  ;;  %v2418_v23 = vld [vmem:[#allocation6 + $0xa0] sm:$0xf]  ;;  %v2772_v24 = vld [vmem:[#allocation6 + $0xac] sm:$0xf0]  ;;  %v2420_v32 = vld [vmem:[#allocation6 + $0xb0] sm:$0xf0] }
  0x34   : > { %v2546_v26 = vld [vmem:[#allocation6 + $0x1a0] sm:$0xf]  ;;  %v2804_v27 = vld [vmem:[#allocation6 + $0x1ac] sm:$0xf0]  ;;  %1121 = vmatpush.bf16.msra.mxu0 %v2435_v16  ;;  %v2419_v29 = vor.u32 %v2772_v24, %v2418_v23  ;;  %v2423_v38 = vor.u32 %v2770_v31, %v2420_v32  ;;  %v2766_v42 = vld [vmem:[#allocation6 + $0x84] sm:$0xf] }
  0x35   : > { %v2674_v28 = vld [vmem:[#allocation6 + $0x2a0] sm:$0xf]  ;;  %v2836_v30 = vld [vmem:[#allocation6 + $0x2ac] sm:$0xf0]  ;;  %1170 = vmatpush.bf16.msra.mxu1 %v2563_v17  ;;  %v2547_v33 = vor.u32 %v2804_v27, %v2546_v26  ;;  %v2404_v43 = vld [vmem:[#allocation6 + $0x90] sm:$0xf0] }
  0x36   : > { %1219 = vmatpush.bf16.msra.mxu2 %v2691_v21  ;;  %v2675_v34 = vor.u32 %v2836_v30, %v2674_v28  ;;  %v2402_v35 = vld [vmem:[#allocation6 + $0x80] sm:$0xf]  ;;  %v2768_v36 = vld [vmem:[#allocation6 + $0x8c] sm:$0xf0]  ;;  %1268 = vmatpush.bf16.msra.mxu3 %v2439_v25  ;;  %v2407_v50 = vor.u32 %v2766_v42, %v2404_v43  ;;  %v2762_v54 = vld [vmem:[#allocation6 + $0x64] sm:$0xf] }
  0x37   : > { %v2530_v37 = vld [vmem:[#allocation6 + $0x180] sm:$0xf]  ;;  %v2800_v39 = vld [vmem:[#allocation6 + $0x18c] sm:$0xf0]  ;;  %v2403_v44 = vor.u32 %v2768_v36, %v2402_v35  ;;  %v2388_v55 = vld [vmem:[#allocation6 + $0x70] sm:$0xf0] }
  0x38   : > { %v2658_v40 = vld [vmem:[#allocation6 + $0x280] sm:$0xf]  ;;  %v2832_v41 = vld [vmem:[#allocation6 + $0x28c] sm:$0xf0]  ;;  %1122 = vmatpush.bf16.msra.mxu0 %v2419_v29  ;;  %v2531_v45 = vor.u32 %v2800_v39, %v2530_v37  ;;  %v2391_v62 = vor.u32 %v2762_v54, %v2388_v55  ;;  %v2758_v2 = vld [vmem:[#allocation6 + $0x44] sm:$0xf] }
  0x39   : > { %1171 = vmatpush.bf16.msra.mxu1 %v2547_v33  ;;  %v2659_v46 = vor.u32 %v2832_v41, %v2658_v40  ;;  %v2386_v47 = vld [vmem:[#allocation6 + $0x60] sm:$0xf]  ;;  %v2764_v48 = vld [vmem:[#allocation6 + $0x6c] sm:$0xf0]  ;;  %v2372_v3 = vld [vmem:[#allocation6 + $0x50] sm:$0xf0] }
  0x3a   : > { %1220 = vmatpush.bf16.msra.mxu2 %v2675_v34  ;;  %v2514_v49 = vld [vmem:[#allocation6 + $0x160] sm:$0xf]  ;;  %1269 = vmatpush.bf16.msra.mxu3 %v2423_v38  ;;  %v2796_v51 = vld [vmem:[#allocation6 + $0x16c] sm:$0xf0]  ;;  %v2387_v56 = vor.u32 %v2764_v48, %v2386_v47  ;;  %v2375_v10 = vor.u32 %v2758_v2, %v2372_v3  ;;  %v2754_v14 = vld [vmem:[#allocation6 + $0x24] sm:$0xf] }
  0x3b   : > { %v2642_v52 = vld [vmem:[#allocation6 + $0x260] sm:$0xf]  ;;  %v2828_v53 = vld [vmem:[#allocation6 + $0x26c] sm:$0xf0]  ;;  %v2515_v57 = vor.u32 %v2796_v51, %v2514_v49  ;;  %v2356_v15 = vld [vmem:[#allocation6 + $0x30] sm:$0xf0] }
  0x3c   : > { %1123 = vmatpush.bf16.msra.mxu0 %v2403_v44  ;;  %v2643_v58 = vor.u32 %v2828_v53, %v2642_v52  ;;  %v2370_v59 = vld [vmem:[#allocation6 + $0x40] sm:$0xf]  ;;  %v2760_v60 = vld [vmem:[#allocation6 + $0x4c] sm:$0xf0]  ;;  %v2359_v25 = vor.u32 %v2754_v14, %v2356_v15  ;;  %v2750_v26 = vld [vmem:[#allocation6 + $0x4] sm:$0xf] }
  0x3d   : > { %1172 = vmatpush.bf16.msra.mxu1 %v2531_v45  ;;  %v2498_v61 = vld [vmem:[#allocation6 + $0x140] sm:$0xf]  ;;  %v2792_v63 = vld [vmem:[#allocation6 + $0x14c] sm:$0xf0]  ;;  %v2371_v4 = vor.u32 %v2760_v60, %v2370_v59  ;;  %v2340_v27 = vld [vmem:[#allocation6 + $0x10] sm:$0xf0] }
  0x3e   : > { %1221 = vmatpush.bf16.msra.mxu2 %v2659_v46  ;;  %1270 = vmatpush.bf16.msra.mxu3 %v2407_v50  ;;  %v2626_v0 = vld [vmem:[#allocation6 + $0x240] sm:$0xf]  ;;  %v2824_v1 = vld [vmem:[#allocation6 + $0x24c] sm:$0xf0]  ;;  %v2499_v5 = vor.u32 %v2792_v63, %v2498_v61  ;;  %v2727_v29 = vld [vmem:[%s3246_s29 + $0x8] sm:$0xf0]  ;;  %v2343_v41 = vor.u32 %v2750_v26, %v2340_v27 }
  0x3f   : > { %v2627_v6 = vor.u32 %v2824_v1, %v2626_v0  ;;  %v2354_v7 = vld [vmem:[#allocation6 + $0x20] sm:$0xf]  ;;  %v2756_v8 = vld [vmem:[#allocation6 + $0x2c] sm:$0xf0]  ;;  %v2458_v30 = vld [vmem:[#allocation6 + $0xe8] sm:$0xf] }
  0x40   : > { %1124 = vmatpush.bf16.msra.mxu0 %v2387_v56  ;;  %v2482_v9 = vld [vmem:[#allocation6 + $0x120] sm:$0xf]  ;;  %v2788_v11 = vld [vmem:[#allocation6 + $0x12c] sm:$0xf0]  ;;  %v2355_v16 = vor.u32 %v2756_v8, %v2354_v7  ;;  %v2781_v31 = vld [vmem:[#allocation6 + $0xf4] sm:$0xf0] }
  0x41   : > { %1173 = vmatpush.bf16.msra.mxu1 %v2515_v57  ;;  %v2610_v12 = vld [vmem:[#allocation6 + $0x220] sm:$0xf]  ;;  %v2820_v13 = vld [vmem:[#allocation6 + $0x22c] sm:$0xf0]  ;;  %v2483_v20 = vor.u32 %v2788_v11, %v2482_v9  ;;  %v2726_v33 = vld [vmem:[%s3246_s29 + $0x4] sm:$0xf]  ;;  %v2459_v42 = vor.u32 %v2781_v31, %v2458_v30 }
  0x42   : > { %1222 = vmatpush.bf16.msra.mxu2 %v2643_v58  ;;  %1271 = vmatpush.bf16.msra.mxu3 %v2391_v62  ;;  %v2338_v17 = vld [vmem:[#allocation6] sm:$0xf]  ;;  %v2752_v18 = vld [vmem:[#allocation6 + $0xc] sm:$0xf0]  ;;  %v2611_v21 = vor.u32 %v2820_v13, %v2610_v12  ;;  %v2586_v34 = vld [vmem:[#allocation6 + $0x1e8] sm:$0xf] }
  0x43   : > { %v2466_v19 = vld [vmem:[#allocation6 + $0x100] sm:$0xf]  ;;  %v2784_v22 = vld [vmem:[#allocation6 + $0x10c] sm:$0xf0]  ;;  %v2339_v32 = vor.u32 %v2752_v18, %v2338_v17  ;;  %v2813_v35 = vld [vmem:[#allocation6 + $0x1f4] sm:$0xf0] }
  0x44   : > { %1125 = vmatpush.bf16.msra.mxu0 %v2371_v4  ;;  %v2594_v23 = vld [vmem:[#allocation6 + $0x200] sm:$0xf]  ;;  %v2816_v24 = vld [vmem:[#allocation6 + $0x20c] sm:$0xf0]  ;;  %v2467_v36 = vor.u32 %v2784_v22, %v2466_v19  ;;  %v2250_v39 = vld [vmem:[%s3246_s29 + $0x8] sm:$0xf]  ;;  %v2587_v47 = vor.u32 %v2813_v35, %v2586_v34 }
  0x45   : > { %1174 = vmatpush.bf16.msra.mxu1 %v2499_v5  ;;  %v2242_v28 = vld [vmem:[%s3246_s29] sm:$0xf]  ;;  %v2595_v37 = vor.u32 %v2816_v24, %v2594_v23  ;;  %v2244_v38 = vld [vmem:[%s3246_s29 + $0xc] sm:$0xf0]  ;;  %v2728_v40 = vld [vmem:[%s3246_s29 + $0x10] sm:$0xf0] }
  0x46   : > { %1223 = vmatpush.bf16.msra.mxu2 %v2627_v6  ;;  %1272 = vmatpush.bf16.msra.mxu3 %v2375_v10  ;;  %v2842_v43 = vld [vmem:[#allocation6 + $0x2e4] sm:$0xf]  ;;  %v2708_v44 = vld [vmem:[#allocation6 + $0x2f0] sm:$0xf0]  ;;  %v3262_v46 = vor.u32 %v2727_v29, %v2242_v28  ;;  %v2442_v49 = vld [vmem:[#allocation6 + $0xc8] sm:$0xf]  ;;  %v3264_v51 = vor.u32 %v2726_v33, %v2244_v38  ;;  %v3266_v52 = vor.u32 %v2728_v40, %v2250_v39 }
  0x47   : > { %v2810_v45 = vld [vmem:[#allocation6 + $0x1e4] sm:$0xf]  ;;  %v2580_v48 = vld [vmem:[#allocation6 + $0x1f0] sm:$0xf0]  ;;  %v2777_v50 = vld [vmem:[#allocation6 + $0xd4] sm:$0xf0]  ;;  %v2711_v55 = vor.u32 %v2842_v43, %v2708_v44 }
  0x48   : > { %1126 = vmatpush.bf16.msra.mxu0 %v2355_v16  ;;  %v2570_v53 = vld [vmem:[#allocation6 + $0x1c8] sm:$0xf]  ;;  %v2809_v54 = vld [vmem:[#allocation6 + $0x1d4] sm:$0xf0]  ;;  %v2583_v56 = vor.u32 %v2810_v45, %v2580_v48  ;;  %v2443_v57 = vor.u32 %v2777_v50, %v2442_v49  ;;  %v2838_v58 = vld [vmem:[#allocation6 + $0x2c4] sm:$0xf] }
  0x49   : > { %1175 = vmatpush.bf16.msra.mxu1 %v2483_v20  ;;  %v2692_v59 = vld [vmem:[#allocation6 + $0x2d0] sm:$0xf0]  ;;  %v2571_v60 = vor.u32 %v2809_v54, %v2570_v53  ;;  %v2806_v61 = vld [vmem:[#allocation6 + $0x1c4] sm:$0xf]  ;;  %v2426_v0 = vld [vmem:[#allocation6 + $0xa8] sm:$0xf] }
  0x4a   : > { %1224 = vmatpush.bf16.msra.mxu2 %v2611_v21  ;;  %1273 = vmatpush.bf16.msra.mxu3 %v2359_v25  ;;  %v2564_v62 = vld [vmem:[#allocation6 + $0x1d0] sm:$0xf0]  ;;  %v2695_v63 = vor.u32 %v2838_v58, %v2692_v59  ;;  %v2773_v1 = vld [vmem:[#allocation6 + $0xb4] sm:$0xf0]  ;;  %v2554_v2 = vld [vmem:[#allocation6 + $0x1a8] sm:$0xf] }
  0x4b   : > { %v2567_v3 = vor.u32 %v2806_v61, %v2564_v62  ;;  %v2427_v4 = vor.u32 %v2773_v1, %v2426_v0  ;;  %v2805_v5 = vld [vmem:[#allocation6 + $0x1b4] sm:$0xf0]  ;;  %v2834_v6 = vld [vmem:[#allocation6 + $0x2a4] sm:$0xf]  ;;  %v2676_v7 = vld [vmem:[#allocation6 + $0x2b0] sm:$0xf0] }
  0x4c   : > { %1127 = vmatpush.bf16.msra.mxu0 %v2339_v32  ;;  %v2555_v8 = vor.u32 %v2805_v5, %v2554_v2  ;;  %v2802_v9 = vld [vmem:[#allocation6 + $0x1a4] sm:$0xf]  ;;  %v2548_v10 = vld [vmem:[#allocation6 + $0x1b0] sm:$0xf0]  ;;  %v2679_v11 = vor.u32 %v2834_v6, %v2676_v7  ;;  %v2254_v13 = vld [vmem:[%s3246_s29 + $0x18] sm:$0xf] }
  0x4d   : > { %1176 = vmatpush.bf16.msra.mxu1 %v2467_v36  ;;  %v2551_v12 = vor.u32 %v2802_v9, %v2548_v10  ;;  %v2730_v14 = vld [vmem:[%s3246_s29 + $0x20] sm:$0xf0]  ;;  %v2729_v15 = vld [vmem:[%s3246_s29 + $0x1c] sm:$0xf]  ;;  %v2256_v16 = vld [vmem:[%s3246_s29 + $0x24] sm:$0xf0] }
  0x4e   : > { %1225 = vmatpush.bf16.msra.mxu2 %v2595_v37  ;;  %1274 = vmatpush.bf16.msra.mxu3 %v2343_v41  ;;  %v2262_v17 = vld [vmem:[%s3246_s29 + $0x20] sm:$0xf]  ;;  %v2731_v18 = vld [vmem:[%s3246_s29 + $0x28] sm:$0xf0]  ;;  %v3278_v19 = vor.u32 %v2730_v14, %v2254_v13  ;;  %v3280_v20 = vor.u32 %v2729_v15, %v2256_v16  ;;  %v2410_v22 = vld [vmem:[#allocation6 + $0x88] sm:$0xf] }
  0x4f   : > { %1128 = vmatmul.bf16.vlgmr.msra.gmra.mxu0 %v3262_v46  ;;  %v3282_v21 = vor.u32 %v2731_v18, %v2262_v17  ;;  %v2769_v23 = vld [vmem:[#allocation6 + $0x94] sm:$0xf0]  ;;  %v2538_v24 = vld [vmem:[#allocation6 + $0x188] sm:$0xf]  ;;  %v2830_v27 = vld [vmem:[#allocation6 + $0x284] sm:$0xf] }
  0x50   : > { %1177 = vmatmul.bf16.vlgmr.msra.gmra.mxu1 %v3264_v51  ;;  %1316 = vmatpush.bf16.msrb.mxu0 %v2583_v56  ;;  %v2411_v25 = vor.u32 %v2769_v23, %v2410_v22  ;;  %v2801_v26 = vld [vmem:[#allocation6 + $0x194] sm:$0xf0]  ;;  %v2660_v28 = vld [vmem:[#allocation6 + $0x290] sm:$0xf0]  ;;  %v2798_v31 = vld [vmem:[#allocation6 + $0x184] sm:$0xf] }
  0x51   : > { %1226 = vmatmul.bf16.vlgmr.msra.gmra.mxu2 %v3266_v52  ;;  %1275 = vmatmul.bf16.vlgmr.msra.gmra.mxu3 %v3262_v46  ;;  %v2539_v29 = vor.u32 %v2801_v26, %v2538_v24  ;;  %v2663_v30 = vor.u32 %v2830_v27, %v2660_v28  ;;  %v2532_v32 = vld [vmem:[#allocation6 + $0x190] sm:$0xf0]  ;;  %v2266_v34 = vld [vmem:[%s3246_s29 + $0x30] sm:$0xf]  ;;  %v2733_v35 = vld [vmem:[%s3246_s29 + $0x38] sm:$0xf0] }
  0x52   : > { %1414 = vmatpush.bf16.msrb.mxu2 %v2459_v42  ;;  %1463 = vmatpush.bf16.msrb.mxu3 %v2587_v47  ;;  %v2535_v33 = vor.u32 %v2798_v31, %v2532_v32  ;;  %v2732_v36 = vld [vmem:[%s3246_s29 + $0x34] sm:$0xf]  ;;  %v2268_v37 = vld [vmem:[%s3246_s29 + $0x3c] sm:$0xf0]  ;;  %v2274_v38 = vld [vmem:[%s3246_s29 + $0x38] sm:$0xf]  ;;  %v3294_v40 = vor.u32 %v2733_v35, %v2266_v34 }
  0x53   : > { %1365 = vmatpush.bf16.msrb.mxu1 %v2711_v55  ;;  %v2734_v39 = vld [vmem:[%s3246_s29 + $0x40] sm:$0xf0]  ;;  %v3296_v41 = vor.u32 %v2732_v36, %v2268_v37  ;;  %v2394_v43 = vld [vmem:[#allocation6 + $0x68] sm:$0xf]  ;;  %v2765_v44 = vld [vmem:[#allocation6 + $0x74] sm:$0xf0] }
  0x54   : > { %1317 = vmatpush.bf16.msrb.mxu0 %v2567_v3  ;;  %v3298_v42 = vor.u32 %v2734_v39, %v2274_v38  ;;  %v2522_v45 = vld [vmem:[#allocation6 + $0x168] sm:$0xf]  ;;  %v2395_v47 = vor.u32 %v2765_v44, %v2394_v43  ;;  %v2797_v48 = vld [vmem:[#allocation6 + $0x174] sm:$0xf0]  ;;  %v2826_v49 = vld [vmem:[#allocation6 + $0x264] sm:$0xf] }
  0x55   : > { %v2644_v50 = vld [vmem:[#allocation6 + $0x270] sm:$0xf0]  ;;  %v2523_v53 = vor.u32 %v2797_v48, %v2522_v45  ;;  %v2794_v55 = vld [vmem:[#allocation6 + $0x164] sm:$0xf]  ;;  %v2278_v58 = vld [vmem:[%s3246_s29 + $0x48] sm:$0xf] }
  0x56   : > { %1415 = vmatpush.bf16.msrb.mxu2 %v2443_v57  ;;  %1464 = vmatpush.bf16.msrb.mxu3 %v2571_v60  ;;  %v2647_v54 = vor.u32 %v2826_v49, %v2644_v50  ;;  %v2516_v56 = vld [vmem:[#allocation6 + $0x170] sm:$0xf0]  ;;  %v2735_v60 = vld [vmem:[%s3246_s29 + $0x4c] sm:$0xf]  ;;  %v2280_v61 = vld [vmem:[%s3246_s29 + $0x54] sm:$0xf0] }
  0x57   : > { %1366 = vmatpush.bf16.msrb.mxu1 %v2695_v63  ;;  %v2519_v57 = vor.u32 %v2794_v55, %v2516_v56  ;;  %v2736_v59 = vld [vmem:[%s3246_s29 + $0x50] sm:$0xf0]  ;;  %v2286_v62 = vld [vmem:[%s3246_s29 + $0x50] sm:$0xf]  ;;  %v2737_v63 = vld [vmem:[%s3246_s29 + $0x58] sm:$0xf0]  ;;  %v3312_v1 = vor.u32 %v2735_v60, %v2280_v61 }
  0x58   : > { %1318 = vmatpush.bf16.msrb.mxu0 %v2551_v12  ;;  %v3310_v0 = vor.u32 %v2736_v59, %v2278_v58  ;;  %v3314_v2 = vor.u32 %v2737_v63, %v2286_v62  ;;  %v2378_v3 = vld [vmem:[#allocation6 + $0x48] sm:$0xf]  ;;  %v2793_v7 = vld [vmem:[#allocation6 + $0x154] sm:$0xf0]  ;;  %v2628_v9 = vld [vmem:[#allocation6 + $0x250] sm:$0xf0] }
  0x59   : > { %v2506_v5 = vld [vmem:[#allocation6 + $0x148] sm:$0xf]  ;;  %v2790_v12 = vld [vmem:[#allocation6 + $0x144] sm:$0xf]  ;;  %v2500_v13 = vld [vmem:[#allocation6 + $0x150] sm:$0xf0] }
  0x5a   : > { %1416 = vmatpush.bf16.msrb.mxu2 %v2427_v4  ;;  %1465 = vmatpush.bf16.msrb.mxu3 %v2555_v8  ;;  %v2761_v4 = vld [vmem:[#allocation6 + $0x54] sm:$0xf0]  ;;  %v2822_v8 = vld [vmem:[#allocation6 + $0x244] sm:$0xf]  ;;  %v2507_v10 = vor.u32 %v2793_v7, %v2506_v5  ;;  %v2503_v14 = vor.u32 %v2790_v12, %v2500_v13  ;;  %v2290_v15 = vld [vmem:[%s3246_s29 + $0x60] sm:$0xf] }
  0x5b   : > { %1367 = vmatpush.bf16.msrb.mxu1 %v2679_v11  ;;  %v2379_v6 = vor.u32 %v2761_v4, %v2378_v3  ;;  %v2631_v11 = vor.u32 %v2822_v8, %v2628_v9  ;;  %v2739_v16 = vld [vmem:[%s3246_s29 + $0x68] sm:$0xf0]  ;;  %v2738_v17 = vld [vmem:[%s3246_s29 + $0x64] sm:$0xf]  ;;  %v2292_v18 = vld [vmem:[%s3246_s29 + $0x6c] sm:$0xf0] }
  0x5c   : > { %1319 = vmatpush.bf16.msrb.mxu0 %v2535_v33  ;;  %v2298_v22 = vld [vmem:[%s3246_s29 + $0x68] sm:$0xf]  ;;  %v2740_v23 = vld [vmem:[%s3246_s29 + $0x70] sm:$0xf0]  ;;  %v3326_v24 = vor.u32 %v2739_v16, %v2290_v15  ;;  %v2757_v28 = vld [vmem:[#allocation6 + $0x34] sm:$0xf0] }
  0x5d   : > { %v3330_v26 = vor.u32 %v2740_v23, %v2298_v22  ;;  %v2362_v27 = vld [vmem:[#allocation6 + $0x28] sm:$0xf]  ;;  %v2789_v31 = vld [vmem:[#allocation6 + $0x134] sm:$0xf0]  ;;  %v2818_v32 = vld [vmem:[#allocation6 + $0x224] sm:$0xf] }
  0x5e   : > { %1417 = vmatpush.bf16.msrb.mxu2 %v2411_v25  ;;  %1466 = vmatpush.bf16.msrb.mxu3 %v2539_v29  ;;  %v3328_v25 = vor.u32 %v2738_v17, %v2292_v18  ;;  %v2490_v29 = vld [vmem:[#allocation6 + $0x128] sm:$0xf]  ;;  %v2612_v33 = vld [vmem:[#allocation6 + $0x230] sm:$0xf0]  ;;  %v2786_v36 = vld [vmem:[#allocation6 + $0x124] sm:$0xf] }
  0x5f   : > { %1133 = vmatmul.bf16.gmra.mxu0 %v3278_v19  ;;  %1368 = vmatpush.bf16.msrb.mxu1 %v2663_v30  ;;  %v2363_v30 = vor.u32 %v2757_v28, %v2362_v27  ;;  %v2491_v34 = vor.u32 %v2789_v31, %v2490_v29  ;;  %v2615_v35 = vor.u32 %v2818_v32, %v2612_v33  ;;  %v2484_v37 = vld [vmem:[#allocation6 + $0x130] sm:$0xf0]  ;;  %v2302_v39 = vld [vmem:[%s3246_s29 + $0x78] sm:$0xf]  ;;  %v2742_v43 = vld [vmem:[%s3246_s29 + $0x80] sm:$0xf0] }
  0x60   : > { %1182 = vmatmul.bf16.gmra.mxu1 %v3280_v20  ;;  %1320 = vmatpush.bf16.msrb.mxu0 %v2519_v57  ;;  %v2487_v38 = vor.u32 %v2786_v36, %v2484_v37  ;;  %v2741_v44 = vld [vmem:[%s3246_s29 + $0x7c] sm:$0xf]  ;;  %v2304_v45 = vld [vmem:[%s3246_s29 + $0x84] sm:$0xf0]  ;;  %v2743_v48 = vld [vmem:[%s3246_s29 + $0x88] sm:$0xf0]  ;;  %v3342_v49 = vor.u32 %v2742_v43, %v2302_v39 }
  0x61   : > { %1231 = vmatmul.bf16.gmra.mxu2 %v3282_v21  ;;  %1280 = vmatmul.bf16.gmra.mxu3 %v3278_v19  ;;  %v3344_v50 = vor.u32 %v2741_v44, %v2304_v45  ;;  %v2753_v55 = vld [vmem:[#allocation6 + $0x14] sm:$0xf0]  ;;  %v2474_v56 = vld [vmem:[#allocation6 + $0x108] sm:$0xf]  ;;  %v2814_v59 = vld [vmem:[#allocation6 + $0x204] sm:$0xf] }
  0x62   : > { %1418 = vmatpush.bf16.msrb.mxu2 %v2395_v47  ;;  %1467 = vmatpush.bf16.msrb.mxu3 %v2523_v53  ;;  %v2310_v47 = vld [vmem:[%s3246_s29 + $0x80] sm:$0xf]  ;;  %v2785_v58 = vld [vmem:[#allocation6 + $0x114] sm:$0xf0]  ;;  %v2596_v60 = vld [vmem:[#allocation6 + $0x210] sm:$0xf0] }
  0x63   : > { %1369 = vmatpush.bf16.msrb.mxu1 %v2647_v54  ;;  %v3346_v53 = vor.u32 %v2743_v48, %v2310_v47  ;;  %v2346_v54 = vld [vmem:[#allocation6 + $0x8] sm:$0xf]  ;;  %v2475_v61 = vor.u32 %v2785_v58, %v2474_v56  ;;  %v2599_v62 = vor.u32 %v2814_v59, %v2596_v60  ;;  %v2782_v63 = vld [vmem:[#allocation6 + $0x104] sm:$0xf]  ;;  %v2468_v3 = vld [vmem:[#allocation6 + $0x110] sm:$0xf0] }
  0x64   : > { %1321 = vmatpush.bf16.msrb.mxu0 %v2503_v14  ;;  %v2347_v57 = vor.u32 %v2753_v55, %v2346_v54  ;;  %v2471_v4 = vor.u32 %v2782_v63, %v2468_v3  ;;  %v2314_v5 = vld [vmem:[%s3246_s29 + $0x90] sm:$0xf]  ;;  %v2744_v7 = vld [vmem:[%s3246_s29 + $0x94] sm:$0xf]  ;;  %v2316_v8 = vld [vmem:[%s3246_s29 + $0x9c] sm:$0xf0] }
  0x65   : > { %v2322_v9 = vld [vmem:[%s3246_s29 + $0x98] sm:$0xf]  ;;  %v3360_v12 = vor.u32 %v2744_v7, %v2316_v8  ;;  %v2811_v14 = vld [vmem:[#allocation6 + $0x1ec] sm:$0xf]  ;;  %v2588_v15 = vld [vmem:[#allocation6 + $0x1f8] sm:$0xf0] }
  0x66   : > { %1419 = vmatpush.bf16.msrb.mxu2 %v2379_v6  ;;  %1468 = vmatpush.bf16.msrb.mxu3 %v2507_v10  ;;  %v2745_v6 = vld [vmem:[%s3246_s29 + $0x98] sm:$0xf0]  ;;  %v2746_v10 = vld [vmem:[%s3246_s29 + $0xa0] sm:$0xf0]  ;;  %v2843_v16 = vld [vmem:[#allocation6 + $0x2ec] sm:$0xf]  ;;  %v2591_v17 = vor.u32 %v2811_v14, %v2588_v15 }
  0x67   : > { %1370 = vmatpush.bf16.msrb.mxu1 %v2631_v11  ;;  %v3358_v11 = vor.u32 %v2745_v6, %v2314_v5  ;;  %v3362_v13 = vor.u32 %v2746_v10, %v2322_v9  ;;  %v2716_v18 = vld [vmem:[#allocation6 + $0x2f8] sm:$0xf0]  ;;  %v2326_v23 = vld [vmem:[%s3246_s29 + $0xa8] sm:$0xf]  ;;  %v2748_v27 = vld [vmem:[%s3246_s29 + $0xb0] sm:$0xf0] }
  0x68   : > { %1322 = vmatpush.bf16.msrb.mxu0 %v2487_v38  ;;  %v2719_v22 = vor.u32 %v2843_v16, %v2716_v18  ;;  %v2747_v28 = vld [vmem:[%s3246_s29 + $0xac] sm:$0xf]  ;;  %v2328_v29 = vld [vmem:[%s3246_s29 + $0xb4] sm:$0xf0]  ;;  %v2460_v31 = vld [vmem:[#allocation6 + $0xf8] sm:$0xf0]  ;;  %v3374_v38 = vor.u32 %v2748_v27, %v2326_v23 }
  0x69   : > { %v2714_v32 = vld [vmem:[#allocation6 + $0x2e8] sm:$0xf]  ;;  %v2334_v33 = vld [vmem:[%s3246_s29 + $0xb0] sm:$0xf]  ;;  %v2845_v36 = vld [vmem:[#allocation6 + $0x2f4] sm:$0xf0]  ;;  %v3376_v39 = vor.u32 %v2747_v28, %v2328_v29 }
  0x6a   : > { %1420 = vmatpush.bf16.msrb.mxu2 %v2363_v30  ;;  %1469 = vmatpush.bf16.msrb.mxu3 %v2491_v34  ;;  %v2779_v30 = vld [vmem:[#allocation6 + $0xec] sm:$0xf]  ;;  %v2749_v34 = vld [vmem:[%s3246_s29 + $0xb8] sm:$0xf0]  ;;  %v2715_v37 = vor.u32 %v2845_v36, %v2714_v32  ;;  %3760 = vst [vmem:[#allocation13_spill] sm:$0xff] %v3374_v38  ;;  %s2239_s20 = sshll.u32 %s3242_s11, 8 }
  0x6b   : > { %1371 = vmatpush.bf16.msrb.mxu1 %v2615_v35  ;;  %v2463_v35 = vor.u32 %v2779_v30, %v2460_v31  ;;  %3761 = vst [vmem:[#allocation14_spill] sm:$0xff] %v3376_v39  ;;  %v3378_v43 = vor.u32 %v2749_v34, %v2334_v33  ;;  %v2807_v44 = vld [vmem:[#allocation6 + $0x1cc] sm:$0xf]  ;;  %v2572_v45 = vld [vmem:[#allocation6 + $0x1d8] sm:$0xf0]  ;;  %s3502_s22 = scalar_lea.vmem [#allocation9], %s2239_s20 }
  0x6c   : > { %1323 = vmatpush.bf16.msrb.mxu0 %v2471_v4  ;;  %v2839_v47 = vld [vmem:[#allocation6 + $0x2cc] sm:$0xf]  ;;  %v2575_v48 = vor.u32 %v2807_v44, %v2572_v45  ;;  %v2700_v54 = vld [vmem:[#allocation6 + $0x2d8] sm:$0xf0]  ;;  %v2698_v58 = vld [vmem:[#allocation6 + $0x2c8] sm:$0xf] }
  0x6d   : > { %3762 = vst [vmem:[#allocation15_spill] sm:$0xff] %v3378_v43  ;;  %v2703_v55 = vor.u32 %v2839_v47, %v2700_v54  ;;  %v2775_v56 = vld [vmem:[#allocation6 + $0xcc] sm:$0xf]  ;;  %v2841_v60 = vld [vmem:[#allocation6 + $0x2d4] sm:$0xf0]  ;;  %s2847_s27 = sshll.u32 %s3108_s15, 8 }
  0x6e   : > { %1421 = vmatpush.bf16.msrb.mxu2 %v2347_v57  ;;  %1470 = vmatpush.bf16.msrb.mxu3 %v2475_v61  ;;  %v2444_v57 = vld [vmem:[#allocation6 + $0xd8] sm:$0xf0]  ;;  %v2699_v61 = vor.u32 %v2841_v60, %v2698_v58  ;;  %v2803_v4 = vld [vmem:[#allocation6 + $0x1ac] sm:$0xf]  ;;  %v2682_v28 = vld [vmem:[#allocation6 + $0x2a8] sm:$0xf]  ;;  %s2118_s30 = scalar_lea.hbm %s3747_s3, %s2847_s27 }
  0x6f   : > { %1138 = vmatmul.bf16.gmra.mxu0 %v3294_v40  ;;  %1372 = vmatpush.bf16.msrb.mxu1 %v2599_v62  ;;  %v2447_v59 = vor.u32 %v2775_v56, %v2444_v57  ;;  %v2556_v5 = vld [vmem:[#allocation6 + $0x1b8] sm:$0xf0]  ;;  %v2835_v6 = vld [vmem:[#allocation6 + $0x2ac] sm:$0xf]  ;;  %v2837_v29 = vld [vmem:[#allocation6 + $0x2b4] sm:$0xf0] }
  0x70   : > { %1187 = vmatmul.bf16.gmra.mxu1 %v3296_v41  ;;  %1512 = vmatpush.bf16.msra.mxu0 %v2715_v37  ;;  %v2559_v7 = vor.u32 %v2803_v4, %v2556_v5  ;;  %v2684_v8 = vld [vmem:[#allocation6 + $0x2b8] sm:$0xf0]  ;;  %v2683_v30 = vor.u32 %v2837_v29, %v2682_v28  ;;  %v2799_v37 = vld [vmem:[#allocation6 + $0x18c] sm:$0xf]  ;;  %v2833_v4 = vld [vmem:[#allocation6 + $0x294] sm:$0xf0] }
  0x71   : > { %1236 = vmatmul.bf16.gmra.mxu2 %v3298_v42  ;;  %1285 = vmatmul.bf16.gmra.mxu3 %v3294_v40  ;;  %v2687_v10 = vor.u32 %v2835_v6, %v2684_v8  ;;  %v2428_v23 = vld [vmem:[#allocation6 + $0xb8] sm:$0xf0]  ;;  %v2831_v45 = vld [vmem:[#allocation6 + $0x28c] sm:$0xf]  ;;  %s2119_s4 = sshll.u32 %s3502_s22, 4  ;;  %s2121_s15 = sshll.u32 %s2118_s30, 4  ;;  %s2120_s4 = int_to_ptr.vmem [resolvable:$true] %s2119_s4  ;;  %s2122_s15 = int_to_ptr.hbm [resolvable:$true] %s2121_s15 }
  0x72   : > { %1610 = vmatpush.bf16.msra.mxu2 %v2591_v17  ;;  %1659 = vmatpush.bf16.msra.mxu3 %v2719_v22  ;;  %v2771_v22 = vld [vmem:[#allocation6 + $0xac] sm:$0xf]  ;;  %v2540_v44 = vld [vmem:[#allocation6 + $0x198] sm:$0xf0]  ;;  %s2106_s5 = scalar_lea.sflag [#allocation5], %s3242_s11  ;;  %s3044_s6 = sshra.s32 %s2122_s15, 4  ;;  %s3045_s6 = int_to_ptr.hbm [resolvable:$true] %s3044_s6 }
  0x73   : > { %1561 = vmatpush.bf16.msra.mxu1 %v2463_v35  ;;  %v2431_v27 = vor.u32 %v2771_v22, %v2428_v23  ;;  %v2543_v47 = vor.u32 %v2799_v37, %v2540_v44  ;;  %v2827_v22 = vld [vmem:[#allocation6 + $0x26c] sm:$0xf]  ;;  %v2396_v44 = vld [vmem:[#allocation6 + $0x78] sm:$0xf0]  ;;  %s3046_s21 = scalar_lea.hbm %s3045_s6, 256  ;;  %s3050_s9 = scalar_lea.hbm %s3747_s3, 512 }
  0x74   : > { %1513 = vmatpush.bf16.msra.mxu0 %v2699_v61  ;;  %v2767_v61 = vld [vmem:[#allocation6 + $0x8c] sm:$0xf]  ;;  %p3047_p1 = scmp.ne.s32.totalorder %s3045_s6, %s3046_s21  ;;  %p3051_p8 = scmp.lt.s32.totalorder %s3045_s6, %s3747_s3 }
  0x75   : > { %v2763_v37 = vld [vmem:[#allocation6 + $0x6c] sm:$0xf]  ;;  %p3052_p12 = scmp.lt.s32.totalorder %s3050_s9, %s3046_s21 }
  0x76   : > { %1611 = vmatpush.bf16.msra.mxu2 %v2575_v48  ;;  %1660 = vmatpush.bf16.msra.mxu3 %v2703_v55  ;;  %v2668_v48 = vld [vmem:[#allocation6 + $0x298] sm:$0xf0]  ;;  %p3048_p2 = pnand %p3047_p1, %p3225_p7 }
  0x77   : > { %1562 = vmatpush.bf16.msra.mxu1 %v2447_v59  ;;  %v2671_v55 = vor.u32 %v2831_v45, %v2668_v48  ;;  %v2399_v45 = vor.u32 %v2763_v37, %v2396_v44  ;;  %v2829_v48 = vld [vmem:[#allocation6 + $0x274] sm:$0xf0]  ;;  %p3053_p13 = por %p3052_p12, %p3051_p8 }
  0x78   : > { %1514 = vmatpush.bf16.msra.mxu0 %v2683_v30  ;;  %p3049_p4 = pneg %p3048_p2 }
  0x7a   : > { %1612 = vmatpush.bf16.msra.mxu2 %v2559_v7  ;;  %1661 = vmatpush.bf16.msra.mxu3 %v2687_v10  ;;  %p3054_p0 = pnand %p3053_p13, %p3049_p4 }
  0x7b   : > { %1563 = vmatpush.bf16.msra.mxu1 %v2431_v27  ;;  %v2652_v27 = vld [vmem:[#allocation6 + $0x278] sm:$0xf0] }
  0x7c   : > { %v2655_v29 = vor.u32 %v2827_v22, %v2652_v27  ;;  %v2759_v27 = vld [vmem:[#allocation6 + $0x4c] sm:$0xf] }
  0x7e   : > { %1613 = vmatpush.bf16.msra.mxu2 %v2543_v47  ;;  %1662 = vmatpush.bf16.msra.mxu3 %v2671_v55  ;;  %v2650_v47 = vld [vmem:[#allocation6 + $0x268] sm:$0xf] }
  0x7f   : > { %1143 = vmatmul.bf16.gmra.mxu0 %v3310_v0 }
  0x80   : > { %1192 = vmatmul.bf16.gmra.mxu1 %v3312_v1 }
  0x81   : > { %1241 = vmatmul.bf16.gmra.mxu2 %v3314_v2  ;;  %1290 = vmatmul.bf16.gmra.mxu3 %v3310_v0 }
  0x82   : > { %1663 = vmatpush.bf16.msra.mxu3 %v2655_v29 }
  0x8f   : > { %1148 = vmatmul.bf16.gmra.mxu0 %v3326_v24 }
  0x90   : > { %1197 = vmatmul.bf16.gmra.mxu1 %v3328_v25 }
  0x91   : > { %1246 = vmatmul.bf16.gmra.mxu2 %v3330_v26  ;;  %1295 = vmatmul.bf16.gmra.mxu3 %v3326_v24 }
  0x9f   : > { %1153 = vmatmul.bf16.gmra.mxu0 %v3342_v49 }
  0xa0   : > { %1202 = vmatmul.bf16.gmra.mxu1 %v3344_v50 }
  0xa1   : > { %1251 = vmatmul.bf16.gmra.mxu2 %v3346_v53  ;;  %1300 = vmatmul.bf16.gmra.mxu3 %v3342_v49 }
  0xaf   : > { %1158 = vmatmul.bf16.gmra.mxu0 %v3358_v11 }
  0xb0   : > { %1207 = vmatmul.bf16.gmra.mxu1 %v3360_v12 }
  0xb1   : > { %1256 = vmatmul.bf16.gmra.mxu2 %v3362_v13  ;;  %1305 = vmatmul.bf16.gmra.mxu3 %v3358_v11 }
  0xbf   : > { %1163 = vmatmul.bf16.gmra.mxu0 %v3374_v38 }
  0xc0   : > { %1212 = vmatmul.bf16.gmra.mxu1 %v3376_v39 }
  0xc1   : > { %1261 = vmatmul.bf16.gmra.mxu2 %v3378_v43  ;;  %1310 = vmatmul.bf16.gmra.mxu3 %v3374_v38 }
  0xcc   : > { %v1129_v62 = vpop.f32.mrf.mxu0 }
  0xcd   : > { %v1178_v63 = vpop.f32.mrf.mxu1 }
  0xce   : > { %v1179_v3 = vadd.f32 %v1178_v63, %v1129_v62  ;;  %v2412_v62 = vld [vmem:[#allocation6 + $0x98] sm:$0xf0] }
  0xcf   : > { %1324 = vmatmul.bf16.vlgmr.msrb.gmra.mxu0 %v3264_v51  ;;  %v2415_v63 = vor.u32 %v2767_v61, %v2412_v62 }
  0xd0   : > { %1373 = vmatmul.bf16.vlgmr.msrb.gmra.mxu1 %v3266_v52 }
  0xd1   : > { %1422 = vmatmul.bf16.vlgmr.msrb.gmra.mxu2 %v3262_v46  ;;  %1471 = vmatmul.bf16.vlgmr.msrb.gmra.mxu3 %v3264_v51 }
  0xd2   : > { %1564 = vmatpush.bf16.msra.mxu1 %v2415_v63  ;;  %v2791_v63 = vld [vmem:[#allocation6 + $0x14c] sm:$0xf] }
  0xd4   : > { %v1227_v9 = vpop.f32.mrf.mxu2  ;;  %v3390_v15 = vpop.f32.mrf.mxu3 }
  0xd5   : > { %v3388_v14 = vadd.f32 %v1227_v9, %v1179_v3  ;;  %v1131_v16 = vpop.f32.mrf.mxu0  ;;  %v1180_v17 = vpop.f32.mrf.mxu1  ;;  %v2666_v3 = vld [vmem:[#allocation6 + $0x288] sm:$0xf] }
  0xd6   : > { %v1181_v18 = vadd.f32 %v1180_v17, %v1131_v16  ;;  %v2667_v5 = vor.u32 %v2833_v4, %v2666_v3  ;;  %v2795_v17 = vld [vmem:[#allocation6 + $0x16c] sm:$0xf]  ;;  %1565 = vmatpush.bf16.msra.mxu1 %v2399_v45  ;;  %v2508_v3 = vld [vmem:[#allocation6 + $0x158] sm:$0xf0] }
  0xd7   : > { %v2823_v4 = vld [vmem:[#allocation6 + $0x24c] sm:$0xf] }
  0xd8   : > { %1515 = vmatpush.bf16.msra.mxu0 %v2667_v5  ;;  %v2511_v5 = vor.u32 %v2791_v63, %v2508_v3  ;;  %v2620_v63 = vld [vmem:[#allocation6 + $0x238] sm:$0xf0] }
  0xdc   : > { %v1229_v31 = vpop.f32.mrf.mxu2  ;;  %v3394_v33 = vpop.f32.mrf.mxu3 }
  0xdd   : > { %v3392_v32 = vadd.f32 %v1229_v31, %v1181_v18  ;;  %v1134_v34 = vpop.f32.mrf.mxu0  ;;  %v1183_v35 = vpop.f32.mrf.mxu1  ;;  %v2524_v18 = vld [vmem:[#allocation6 + $0x178] sm:$0xf0] }
  0xde   : > { %v1184_v36 = vadd.f32 %v1183_v35, %v1134_v34  ;;  %v2527_v23 = vor.u32 %v2795_v17, %v2524_v18 }
  0xdf   : > { %1329 = vmatmul.bf16.gmra.mxu0 %v3280_v20 }
  0xe0   : > { %1378 = vmatmul.bf16.gmra.mxu1 %v3282_v21  ;;  %1614 = vmatpush.bf16.msra.mxu2 %v2527_v23 }
  0xe1   : > { %1427 = vmatmul.bf16.gmra.mxu2 %v3278_v19  ;;  %1476 = vmatmul.bf16.gmra.mxu3 %v3280_v20 }
  0xe4   : > { %v1232_v54 = vpop.f32.mrf.mxu2  ;;  %v3402_v57 = vpop.f32.mrf.mxu3  ;;  %1615 = vmatpush.bf16.msra.mxu2 %v2511_v5 }
  0xe5   : > { %v3400_v56 = vadd.f32 %v1232_v54, %v1184_v36  ;;  %v1136_v58 = vpop.f32.mrf.mxu0  ;;  %v1185_v59 = vpop.f32.mrf.mxu1  ;;  %v2651_v54 = vor.u32 %v2829_v48, %v2650_v47 }
  0xe6   : > { %v1186_v60 = vadd.f32 %v1185_v59, %v1136_v58 }
  0xe7   : > { %1516 = vmatpush.bf16.msra.mxu0 %v2651_v54 }
  0xec   : > { %v1234_v6 = vpop.f32.mrf.mxu2  ;;  %v3406_v8 = vpop.f32.mrf.mxu3 }
  0xed   : > { %v3404_v7 = vadd.f32 %v1234_v6, %v1186_v60  ;;  %v1139_v9 = vpop.f32.mrf.mxu0  ;;  %v1188_v10 = vpop.f32.mrf.mxu1  ;;  %v2636_v6 = vld [vmem:[#allocation6 + $0x258] sm:$0xf0] }
  0xee   : > { %v1189_v16 = vadd.f32 %v1188_v10, %v1139_v9  ;;  %v2639_v10 = vor.u32 %v2823_v4, %v2636_v6 }
  0xef   : > { %1334 = vmatmul.bf16.gmra.mxu0 %v3296_v41 }
  0xf0   : > { %1383 = vmatmul.bf16.gmra.mxu1 %v3298_v42  ;;  %1664 = vmatpush.bf16.msra.mxu3 %v2639_v10 }
  0xf1   : > { %1432 = vmatmul.bf16.gmra.mxu2 %v3294_v40  ;;  %1481 = vmatmul.bf16.gmra.mxu3 %v3296_v41 }
  0xf4   : > { %v1237_v28 = vpop.f32.mrf.mxu2  ;;  %v3414_v31 = vpop.f32.mrf.mxu3 }
  0xf5   : > { %v3412_v30 = vadd.f32 %v1237_v28, %v1189_v16  ;;  %v1141_v34 = vpop.f32.mrf.mxu0  ;;  %v1190_v35 = vpop.f32.mrf.mxu1  ;;  %v2380_v28 = vld [vmem:[#allocation6 + $0x58] sm:$0xf0] }
  0xf6   : > { %v1191_v36 = vadd.f32 %v1190_v35, %v1141_v34  ;;  %v2383_v29 = vor.u32 %v2759_v27, %v2380_v28  ;;  %v2634_v34 = vld [vmem:[#allocation6 + $0x248] sm:$0xf]  ;;  %v2825_v35 = vld [vmem:[#allocation6 + $0x254] sm:$0xf0] }
  0xf7   : > { %v2618_v28 = vld [vmem:[#allocation6 + $0x228] sm:$0xf] }
  0xf8   : > { %1566 = vmatpush.bf16.msra.mxu1 %v2383_v29  ;;  %v2821_v29 = vld [vmem:[#allocation6 + $0x234] sm:$0xf0] }
  0xfc   : > { %v1239_v55 = vpop.f32.mrf.mxu2  ;;  %v3418_v59 = vpop.f32.mrf.mxu3 }
  0xfd   : > { %v3416_v58 = vadd.f32 %v1239_v55, %v1191_v36  ;;  %v1144_v60 = vpop.f32.mrf.mxu0  ;;  %v1193_v61 = vpop.f32.mrf.mxu1  ;;  %v2635_v36 = vor.u32 %v2825_v35, %v2634_v34  ;;  %v2787_v55 = vld [vmem:[#allocation6 + $0x12c] sm:$0xf]  ;;  %v2619_v34 = vor.u32 %v2821_v29, %v2618_v28  ;;  %v2348_v28 = vld [vmem:[#allocation6 + $0x18] sm:$0xf0] }
  0xfe   : > { %v1194_v62 = vadd.f32 %v1193_v61, %v1144_v60  ;;  %v2492_v60 = vld [vmem:[#allocation6 + $0x138] sm:$0xf0]  ;;  %v2819_v61 = vld [vmem:[#allocation6 + $0x22c] sm:$0xf] }
  0xff   : > { %1339 = vmatmul.bf16.gmra.mxu0 %v3312_v1  ;;  %v2623_v4 = vor.u32 %v2819_v61, %v2620_v63  ;;  %v2815_v61 = vld [vmem:[#allocation6 + $0x20c] sm:$0xf]  ;;  %v2604_v63 = vld [vmem:[#allocation6 + $0x218] sm:$0xf0] }
 0x100   : > { %1388 = vmatmul.bf16.gmra.mxu1 %v3314_v2  ;;  %1517 = vmatpush.bf16.msra.mxu0 %v2635_v36 }
 0x101   : > { %1437 = vmatmul.bf16.gmra.mxu2 %v3310_v0  ;;  %1486 = vmatmul.bf16.gmra.mxu3 %v3312_v1 }
 0x102   : > { %1665 = vmatpush.bf16.msra.mxu3 %v2623_v4  ;;  %v2607_v4 = vor.u32 %v2815_v61, %v2604_v63 }
 0x104   : > { %v1242_v9 = vpop.f32.mrf.mxu2  ;;  %v3426_v17 = vpop.f32.mrf.mxu3  ;;  %1518 = vmatpush.bf16.msra.mxu0 %v2619_v34  ;;  %v2602_v34 = vld [vmem:[#allocation6 + $0x208] sm:$0xf] }
 0x105   : > { %v3424_v16 = vadd.f32 %v1242_v9, %v1194_v62  ;;  %v1146_v18 = vpop.f32.mrf.mxu0  ;;  %v1195_v22 = vpop.f32.mrf.mxu1  ;;  %v2495_v62 = vor.u32 %v2787_v55, %v2492_v60  ;;  %v2783_v55 = vld [vmem:[#allocation6 + $0x10c] sm:$0xf]  ;;  %v2476_v60 = vld [vmem:[#allocation6 + $0x118] sm:$0xf0] }
 0x106   : > { %v1196_v23 = vadd.f32 %v1195_v22, %v1146_v18  ;;  %v2755_v22 = vld [vmem:[#allocation6 + $0x2c] sm:$0xf]  ;;  %1666 = vmatpush.bf16.msra.mxu3 %v2607_v4 }
 0x107   : > { %1616 = vmatpush.bf16.msra.mxu2 %v2495_v62  ;;  %v2479_v62 = vor.u32 %v2783_v55, %v2476_v60 }
 0x10b   : > { %1617 = vmatpush.bf16.msra.mxu2 %v2479_v62 }
 0x10c   : > { %v1244_v37 = vpop.f32.mrf.mxu2  ;;  %v3430_v45 = vpop.f32.mrf.mxu3 }
 0x10d   : > { %v3428_v44 = vadd.f32 %v1244_v37, %v1196_v23  ;;  %v1149_v47 = vpop.f32.mrf.mxu0  ;;  %v1198_v48 = vpop.f32.mrf.mxu1  ;;  %v2364_v23 = vld [vmem:[#allocation6 + $0x38] sm:$0xf0] }
 0x10e   : > { %v1199_v54 = vadd.f32 %v1198_v48, %v1149_v47  ;;  %v2367_v27 = vor.u32 %v2755_v22, %v2364_v23 }
 0x10f   : > { %1344 = vmatmul.bf16.gmra.mxu0 %v3328_v25 }
 0x110   : > { %1393 = vmatmul.bf16.gmra.mxu1 %v3330_v26 }
 0x111   : > { %1442 = vmatmul.bf16.gmra.mxu2 %v3326_v24  ;;  %1491 = vmatmul.bf16.gmra.mxu3 %v3328_v25 }
 0x112   : > { %1567 = vmatpush.bf16.msra.mxu1 %v2367_v27  ;;  %v2751_v27 = vld [vmem:[#allocation6 + $0xc] sm:$0xf] }
 0x113   : > { %v2351_v29 = vor.u32 %v2751_v27, %v2348_v28 }
 0x114   : > { %v1247_v3 = vpop.f32.mrf.mxu2  ;;  %v3438_v6 = vpop.f32.mrf.mxu3 }
 0x115   : > { %v3436_v5 = vadd.f32 %v1247_v3, %v1199_v54  ;;  %v1151_v9 = vpop.f32.mrf.mxu0  ;;  %v1200_v10 = vpop.f32.mrf.mxu1 }
 0x116   : > { %v1201_v18 = vadd.f32 %v1200_v10, %v1151_v9  ;;  %1568 = vmatpush.bf16.msra.mxu1 %v2351_v29 }
 0x11c   : > { %v1249_v35 = vpop.f32.mrf.mxu2  ;;  %v3442_v37 = vpop.f32.mrf.mxu3 }
 0x11d   : > { %v3440_v36 = vadd.f32 %v1249_v35, %v1201_v18  ;;  %v1154_v47 = vpop.f32.mrf.mxu0  ;;  %v1203_v48 = vpop.f32.mrf.mxu1  ;;  %v2817_v35 = vld [vmem:[#allocation6 + $0x214] sm:$0xf0] }
 0x11e   : > { %v1204_v54 = vadd.f32 %v1203_v48, %v1154_v47  ;;  %v2603_v47 = vor.u32 %v2817_v35, %v2602_v34 }
 0x11f   : > { %1349 = vmatmul.bf16.gmra.mxu0 %v3344_v50 }
 0x120   : > { %1398 = vmatmul.bf16.gmra.mxu1 %v3346_v53  ;;  %1519 = vmatpush.bf16.msra.mxu0 %v2603_v47 }
 0x121   : > { %1447 = vmatmul.bf16.gmra.mxu2 %v3342_v49  ;;  %1496 = vmatmul.bf16.gmra.mxu3 %v3344_v50 }
 0x124   : > { %v1252_v3 = vpop.f32.mrf.mxu2  ;;  %v3450_v10 = vpop.f32.mrf.mxu3 }
 0x125   : > { %v3448_v9 = vadd.f32 %v1252_v3, %v1204_v54  ;;  %v1156_v18 = vpop.f32.mrf.mxu0  ;;  %v1205_v22 = vpop.f32.mrf.mxu1 }
 0x126   : > { %v1206_v23 = vadd.f32 %v1205_v22, %v1156_v18 }
 0x12c   : > { %v1254_v48 = vpop.f32.mrf.mxu2  ;;  %v3454_v60 = vpop.f32.mrf.mxu3 }
 0x12d   : > { %v3452_v55 = vadd.f32 %v1254_v48, %v1206_v23  ;;  %v1159_v54 = vpop.f32.mrf.mxu0  ;;  %v1208_v61 = vpop.f32.mrf.mxu1 }
 0x12e   : > { %v1209_v63 = vadd.f32 %v1208_v61, %v1159_v54 }
 0x12f   : > { %1354 = vmatmul.bf16.gmra.mxu0 %v3360_v12 }
 0x130   : > { %1403 = vmatmul.bf16.gmra.mxu1 %v3362_v13 }
 0x131   : > { %1452 = vmatmul.bf16.gmra.mxu2 %v3358_v11  ;;  %1501 = vmatmul.bf16.gmra.mxu3 %v3360_v12 }
 0x134   : > { %v1257_v62 = vpop.f32.mrf.mxu2  ;;  %v3462_v4 = vpop.f32.mrf.mxu3 }
 0x135   : > { %v3460_v3 = vadd.f32 %v1257_v62, %v1209_v63  ;;  %v1161_v18 = vpop.f32.mrf.mxu0  ;;  %v1210_v22 = vpop.f32.mrf.mxu1 }
 0x136   : > { %v1211_v23 = vadd.f32 %v1210_v22, %v1161_v18  ;;  %v3476_v22 = vld [vmem:[#allocation8] sm:$0xf] }
 0x137   : > { %3763 = vst [vmem:[#allocation16_spill] sm:$0xff] %v3476_v22 }
 0x13c   : > { %v1259_v27 = vpop.f32.mrf.mxu2  ;;  %v3466_v29 = vpop.f32.mrf.mxu3 }
 0x13d   : > { %v3464_v28 = vadd.f32 %v1259_v27, %v1211_v23  ;;  %v1164_v34 = vpop.f32.mrf.mxu0  ;;  %v1213_v35 = vpop.f32.mrf.mxu1  ;;  %v3479_v23 = vperm.slane %v3476_v22, 0 }
 0x13e   : > { %v1214_v47 = vadd.f32 %v1213_v35, %v1164_v34 }
 0x13f   : > { %1359 = vmatmul.bf16.gmra.mxu0 %v3376_v39 }
 0x140   : > { %1408 = vmatmul.bf16.gmra.mxu1 %v3378_v43 }
 0x141   : > { %1457 = vmatmul.bf16.gmra.mxu2 %v3374_v38  ;;  %1506 = vmatmul.bf16.gmra.mxu3 %v3376_v39  ;;  %v3487_v38 = vperm.slane %v3476_v22, 1 }
 0x144   : > { %v1262_v48 = vpop.f32.mrf.mxu2  ;;  %v3474_v61 = vpop.f32.mrf.mxu3 }
 0x145   : > { %v3472_v54 = vadd.f32 %v1262_v48, %v1214_v47  ;;  %v1166_v63 = vpop.f32.mrf.mxu0  ;;  %v1215_v62 = vpop.f32.mrf.mxu1 }
 0x146   : > { %v1216_v18 = vadd.f32 %v1215_v62, %v1166_v63  ;;  %v1913_v63 = vadd.f32 %v3479_v23, %v3388_v14 }
 0x14c   : > { %v1264_v27 = vpop.f32.mrf.mxu2  ;;  %v3483_v35 = vpop.f32.mrf.mxu3 }
 0x14d   : > { %v3481_v34 = vadd.f32 %v1264_v27, %v1216_v18  ;;  %3765 = vst [vmem:[#allocation18_spill] sm:$0xff] %v3483_v35  ;;  %v1325_v39 = vpop.f32.mrf.mxu0  ;;  %v1374_v48 = vpop.f32.mrf.mxu1 }
 0x14e   : > { %v1326_v47 = vadd.f32 %v1325_v39, %v3390_v15  ;;  %v1977_v39 = vmax.f32 %v1913_v63, 0.0 }
 0x14f   : > { %3764 = vst [vmem:[#allocation17_spill] sm:$0xff] %v3481_v34  ;;  %1520 = vmatmul.bf16.vlgmr.msra.gmra.mxu0 %v3266_v52 }
 0x150   : > { %v1375_v62 = vadd.f32 %v1374_v48, %v1326_v47  ;;  %1569 = vmatmul.bf16.vlgmr.msra.gmra.mxu1 %v3262_v46  ;;  %v1917_v46 = vadd.f32 %v3479_v23, %v3392_v32  ;;  %v1921_v32 = vadd.f32 %v3479_v23, %v3400_v56 }
 0x151   : > { %1618 = vmatmul.bf16.vlgmr.msra.gmra.mxu2 %v3264_v51  ;;  %1667 = vmatmul.bf16.vlgmr.msra.gmra.mxu3 %v3266_v52 }
 0x152   : > { %v1914_v18 = vadd.f32 %v3487_v38, %v1375_v62  ;;  %v1981_v48 = vmax.f32 %v1917_v46, 0.0 }
 0x154   : > { %v1978_v15 = vmax.f32 %v1914_v18, 0.0  ;;  %v1423_v27 = vpop.f32.mrf.mxu2  ;;  %v1472_v22 = vpop.f32.mrf.mxu3 }
 0x155   : > { %v1327_v34 = vpop.f32.mrf.mxu0  ;;  %v3497_v43 = vadd.f32 %v1472_v22, %v1423_v27  ;;  %v1376_v47 = vpop.f32.mrf.mxu1 }
 0x156   : > { %v2041_v35 = vpack.c.bf16 %v1978_v15, %v1977_v39  ;;  %v1328_v14 = vadd.f32 %v1327_v34, %v3394_v33 }
 0x158   : > { %2073 = vst [vmem:[%s3502_s22] sm:$0xff] %v2041_v35  ;;  %v1377_v51 = vadd.f32 %v1376_v47, %v1328_v14  ;;  %v1985_v14 = vmax.f32 %v1921_v32, 0.0 }
 0x15a   : > { %v1918_v52 = vadd.f32 %v3487_v38, %v1377_v51 }
 0x15c   : > { %v1982_v63 = vmax.f32 %v1918_v52, 0.0  ;;  %v1425_v62 = vpop.f32.mrf.mxu2  ;;  %v1474_v18 = vpop.f32.mrf.mxu3 }
 0x15d   : > { %v1330_v22 = vpop.f32.mrf.mxu0  ;;  %v3506_v15 = vadd.f32 %v1474_v18, %v1425_v62  ;;  %v1379_v34 = vpop.f32.mrf.mxu1 }
 0x15e   : > { %v2043_v39 = vpack.c.bf16 %v1982_v63, %v1981_v48  ;;  %v1331_v33 = vadd.f32 %v1330_v22, %v3402_v57 }
 0x15f   : > { %1525 = vmatmul.bf16.gmra.mxu0 %v3282_v21 }
 0x160   : > { %2075 = vst [vmem:[%s3502_s22 + $0x10] sm:$0xff] %v2043_v39  ;;  %v1380_v27 = vadd.f32 %v1379_v34, %v1331_v33  ;;  %1574 = vmatmul.bf16.gmra.mxu1 %v3278_v19  ;;  %v1925_v19 = vadd.f32 %v3479_v23, %v3404_v7 }
 0x161   : > { %1623 = vmatmul.bf16.gmra.mxu2 %v3280_v20  ;;  %1672 = vmatmul.bf16.gmra.mxu3 %v3282_v21 }
 0x162   : > { %v1922_v35 = vadd.f32 %v3487_v38, %v1380_v27  ;;  %v1989_v21 = vmax.f32 %v1925_v19, 0.0 }
 0x164   : > { %v1986_v47 = vmax.f32 %v1922_v35, 0.0  ;;  %v1428_v57 = vpop.f32.mrf.mxu2  ;;  %v1477_v46 = vpop.f32.mrf.mxu3  ;;  %v1929_v35 = vadd.f32 %v3479_v23, %v3412_v30 }
 0x165   : > { %v1332_v51 = vpop.f32.mrf.mxu0  ;;  %v3517_v56 = vadd.f32 %v1477_v46, %v1428_v57  ;;  %v1381_v63 = vpop.f32.mrf.mxu1 }
 0x166   : > { %v2045_v52 = vpack.c.bf16 %v1986_v47, %v1985_v14  ;;  %v1333_v48 = vadd.f32 %v1332_v51, %v3406_v8  ;;  %v1993_v47 = vmax.f32 %v1929_v35, 0.0 }
 0x168   : > { %2077 = vst [vmem:[%s3502_s22 + $0x20] sm:$0xff] %v2045_v52  ;;  %v1382_v20 = vadd.f32 %v1381_v63, %v1333_v48 }
 0x16a   : > { %v1926_v62 = vadd.f32 %v3487_v38, %v1382_v20 }
 0x16c   : > { %v1990_v18 = vmax.f32 %v1926_v62, 0.0  ;;  %v1430_v22 = vpop.f32.mrf.mxu2  ;;  %v1479_v39 = vpop.f32.mrf.mxu3 }
 0x16d   : > { %v1335_v33 = vpop.f32.mrf.mxu0  ;;  %v3524_v32 = vadd.f32 %v1479_v39, %v1430_v22  ;;  %v1384_v8 = vpop.f32.mrf.mxu1 }
 0x16e   : > { %v2047_v34 = vpack.c.bf16 %v1990_v18, %v1989_v21  ;;  %v1336_v27 = vadd.f32 %v1335_v33, %v3414_v31 }
 0x16f   : > { %1530 = vmatmul.bf16.gmra.mxu0 %v3298_v42 }
 0x170   : > { %2079 = vst [vmem:[%s3502_s22 + $0x30] sm:$0xff] %v2047_v34  ;;  %v1385_v7 = vadd.f32 %v1384_v8, %v1336_v27  ;;  %1579 = vmatmul.bf16.gmra.mxu1 %v3294_v40  ;;  %v1933_v40 = vadd.f32 %v3479_v23, %v3416_v58  ;;  %v1937_v34 = vadd.f32 %v3479_v23, %v3424_v16 }
 0x171   : > { %1628 = vmatmul.bf16.gmra.mxu2 %v3296_v41  ;;  %1677 = vmatmul.bf16.gmra.mxu3 %v3298_v42 }
 0x172   : > { %v1930_v14 = vadd.f32 %v3487_v38, %v1385_v7  ;;  %v1997_v42 = vmax.f32 %v1933_v40, 0.0  ;;  %v2001_v8 = vmax.f32 %v1937_v34, 0.0 }
 0x174   : > { %v1994_v57 = vmax.f32 %v1930_v14, 0.0  ;;  %v1433_v31 = vpop.f32.mrf.mxu2  ;;  %v1482_v46 = vpop.f32.mrf.mxu3 }
 0x175   : > { %v1337_v51 = vpop.f32.mrf.mxu0  ;;  %v3535_v30 = vadd.f32 %v1482_v46, %v1433_v31  ;;  %v1386_v63 = vpop.f32.mrf.mxu1 }
 0x176   : > { %v2049_v52 = vpack.c.bf16 %v1994_v57, %v1993_v47  ;;  %v1338_v48 = vadd.f32 %v1337_v51, %v3418_v59 }
 0x178   : > { %2081 = vst [vmem:[%s3502_s22 + $0x40] sm:$0xff] %v2049_v52  ;;  %v1387_v41 = vadd.f32 %v1386_v63, %v1338_v48 }
 0x17a   : > { %v1934_v19 = vadd.f32 %v3487_v38, %v1387_v41 }
 0x17c   : > { %v1998_v20 = vmax.f32 %v1934_v19, 0.0  ;;  %v1435_v62 = vpop.f32.mrf.mxu2  ;;  %v1484_v21 = vpop.f32.mrf.mxu3 }
 0x17d   : > { %v1340_v18 = vpop.f32.mrf.mxu0  ;;  %v3542_v39 = vadd.f32 %v1484_v21, %v1435_v62  ;;  %v1389_v59 = vpop.f32.mrf.mxu1 }
 0x17e   : > { %v2051_v22 = vpack.c.bf16 %v1998_v20, %v1997_v42  ;;  %v1341_v33 = vadd.f32 %v1340_v18, %v3426_v17  ;;  %v1945_v42 = vadd.f32 %v3479_v23, %v3436_v5 }
 0x17f   : > { %1535 = vmatmul.bf16.gmra.mxu0 %v3314_v2 }
 0x180   : > { %2083 = vst [vmem:[%s3502_s22 + $0x50] sm:$0xff] %v2051_v22  ;;  %v1390_v58 = vadd.f32 %v1389_v59, %v1341_v33  ;;  %1584 = vmatmul.bf16.gmra.mxu1 %v3310_v0  ;;  %v1941_v0 = vadd.f32 %v3479_v23, %v3428_v44  ;;  %v2009_v62 = vmax.f32 %v1945_v42, 0.0 }
 0x181   : > { %1633 = vmatmul.bf16.gmra.mxu2 %v3312_v1  ;;  %1682 = vmatmul.bf16.gmra.mxu3 %v3314_v2 }
 0x182   : > { %v1938_v27 = vadd.f32 %v3487_v38, %v1390_v58  ;;  %v2005_v2 = vmax.f32 %v1941_v0, 0.0 }
 0x184   : > { %v2002_v35 = vmax.f32 %v1938_v27, 0.0  ;;  %v1438_v17 = vpop.f32.mrf.mxu2  ;;  %v1487_v7 = vpop.f32.mrf.mxu3 }
 0x185   : > { %v1342_v14 = vpop.f32.mrf.mxu0  ;;  %v3553_v16 = vadd.f32 %v1487_v7, %v1438_v17  ;;  %v1391_v31 = vpop.f32.mrf.mxu1 }
 0x186   : > { %v2053_v47 = vpack.c.bf16 %v2002_v35, %v2001_v8  ;;  %v1343_v57 = vadd.f32 %v1342_v14, %v3430_v45 }
 0x188   : > { %2085 = vst [vmem:[%s3502_s22 + $0x60] sm:$0xff] %v2053_v47  ;;  %v1392_v1 = vadd.f32 %v1391_v31, %v1343_v57  ;;  %v1953_v57 = vadd.f32 %v3479_v23, %v3448_v9 }
 0x18a   : > { %v1942_v46 = vadd.f32 %v3487_v38, %v1392_v1  ;;  %v2017_v0 = vmax.f32 %v1953_v57, 0.0  ;;  %v3766_v57 = vld [vmem:[#allocation15_spill] sm:$0xff] }
 0x18c   : > { %v2006_v51 = vmax.f32 %v1942_v46, 0.0  ;;  %v1440_v52 = vpop.f32.mrf.mxu2  ;;  %v1489_v48 = vpop.f32.mrf.mxu3 }
 0x18d   : > { %v1345_v63 = vpop.f32.mrf.mxu0  ;;  %v3560_v41 = vadd.f32 %v1489_v48, %v1440_v52  ;;  %v1394_v45 = vpop.f32.mrf.mxu1 }
 0x18e   : > { %v2055_v40 = vpack.c.bf16 %v2006_v51, %v2005_v2  ;;  %v1346_v19 = vadd.f32 %v1345_v63, %v3438_v6 }
 0x18f   : > { %1540 = vmatmul.bf16.gmra.mxu0 %v3330_v26 }
 0x190   : > { %2087 = vst [vmem:[%s3502_s22 + $0x70] sm:$0xff] %v2055_v40  ;;  %v1395_v44 = vadd.f32 %v1394_v45, %v1346_v19  ;;  %1589 = vmatmul.bf16.gmra.mxu1 %v3326_v24  ;;  %v1949_v24 = vadd.f32 %v3479_v23, %v3440_v36 }
 0x191   : > { %1638 = vmatmul.bf16.gmra.mxu2 %v3328_v25  ;;  %1687 = vmatmul.bf16.gmra.mxu3 %v3330_v26 }
 0x192   : > { %v1946_v20 = vadd.f32 %v3487_v38, %v1395_v44  ;;  %v2013_v26 = vmax.f32 %v1949_v24, 0.0 }
 0x194   : > { %v2010_v21 = vmax.f32 %v1946_v20, 0.0  ;;  %v1443_v6 = vpop.f32.mrf.mxu2  ;;  %v1492_v18 = vpop.f32.mrf.mxu3 }
 0x195   : > { %v1347_v22 = vpop.f32.mrf.mxu0  ;;  %v3571_v5 = vadd.f32 %v1492_v18, %v1443_v6  ;;  %v1396_v34 = vpop.f32.mrf.mxu1 }
 0x196   : > { %v2057_v33 = vpack.c.bf16 %v2010_v21, %v2009_v62  ;;  %v1348_v59 = vadd.f32 %v1347_v22, %v3442_v37  ;;  %v1961_v21 = vadd.f32 %v3479_v23, %v3460_v3 }
 0x198   : > { %2089 = vst [vmem:[%s3502_s22 + $0x80] sm:$0xff] %v2057_v33  ;;  %v1397_v25 = vadd.f32 %v1396_v34, %v1348_v59  ;;  %v2025_v18 = vmax.f32 %v1961_v21, 0.0 }
 0x19a   : > { %v1950_v58 = vadd.f32 %v3487_v38, %v1397_v25 }
 0x19c   : > { %v2014_v27 = vmax.f32 %v1950_v58, 0.0  ;;  %v1445_v8 = vpop.f32.mrf.mxu2  ;;  %v1494_v35 = vpop.f32.mrf.mxu3 }
 0x19d   : > { %v1350_v17 = vpop.f32.mrf.mxu0  ;;  %v3578_v14 = vadd.f32 %v1494_v35, %v1445_v8  ;;  %v1399_v37 = vpop.f32.mrf.mxu1 }
 0x19e   : > { %v2059_v7 = vpack.c.bf16 %v2014_v27, %v2013_v26  ;;  %v1351_v47 = vadd.f32 %v1350_v17, %v3450_v10 }
 0x19f   : > { %1545 = vmatmul.bf16.gmra.mxu0 %v3346_v53 }
 0x1a0   : > { %2091 = vst [vmem:[%s3502_s22 + $0x90] sm:$0xff] %v2059_v7  ;;  %v1400_v36 = vadd.f32 %v1399_v37, %v1351_v47  ;;  %1594 = vmatmul.bf16.gmra.mxu1 %v3342_v49  ;;  %v1957_v49 = vadd.f32 %v3479_v23, %v3452_v55  ;;  %v1969_v37 = vadd.f32 %v3479_v23, %v3472_v54 }
 0x1a1   : > { %1643 = vmatmul.bf16.gmra.mxu2 %v3344_v50  ;;  %1692 = vmatmul.bf16.gmra.mxu3 %v3346_v53 }
 0x1a2   : > { %v1954_v31 = vadd.f32 %v3487_v38, %v1400_v36  ;;  %v2021_v53 = vmax.f32 %v1957_v49, 0.0  ;;  %v3767_v36 = vld [vmem:[#allocation13_spill] sm:$0xff] }
 0x1a4   : > { %v2018_v1 = vmax.f32 %v1954_v31, 0.0  ;;  %v1448_v10 = vpop.f32.mrf.mxu2  ;;  %v1497_v46 = vpop.f32.mrf.mxu3  ;;  %v3768_v31 = vld [vmem:[#allocation14_spill] sm:$0xff] }
 0x1a5   : > { %v1352_v2 = vpop.f32.mrf.mxu0  ;;  %v3589_v9 = vadd.f32 %v1497_v46, %v1448_v10  ;;  %v1401_v48 = vpop.f32.mrf.mxu1 }
 0x1a6   : > { %v2061_v51 = vpack.c.bf16 %v2018_v1, %v2017_v0  ;;  %v1353_v52 = vadd.f32 %v1352_v2, %v3454_v60  ;;  %v2033_v1 = vmax.f32 %v1969_v37, 0.0 }
 0x1a8   : > { %2093 = vst [vmem:[%s3502_s22 + $0xa0] sm:$0xff] %v2061_v51  ;;  %v1402_v50 = vadd.f32 %v1401_v48, %v1353_v52  ;;  %v3769_v52 = vld [vmem:[#allocation18_spill] sm:$0xff] }
 0x1aa   : > { %v1958_v63 = vadd.f32 %v3487_v38, %v1402_v50  ;;  %v3770_v50 = vld [vmem:[#allocation17_spill] sm:$0xff] }
 0x1ac   : > { %v2022_v40 = vmax.f32 %v1958_v63, 0.0  ;;  %v1450_v19 = vpop.f32.mrf.mxu2  ;;  %v1499_v45 = vpop.f32.mrf.mxu3  ;;  %v1973_v63 = vadd.f32 %v3479_v23, %v3770_v50 }
 0x1ad   : > { %v1355_v42 = vpop.f32.mrf.mxu0  ;;  %v3596_v20 = vadd.f32 %v1499_v45, %v1450_v19  ;;  %v1404_v60 = vpop.f32.mrf.mxu1 }
 0x1ae   : > { %v2063_v44 = vpack.c.bf16 %v2022_v40, %v2021_v53  ;;  %v1356_v62 = vadd.f32 %v1355_v42, %v3462_v4  ;;  %v2037_v19 = vmax.f32 %v1973_v63, 0.0 }
 0x1af   : > { %1550 = vmatmul.bf16.gmra.mxu0 %v3362_v13 }
 0x1b0   : > { %2095 = vst [vmem:[%s3502_s22 + $0xb0] sm:$0xff] %v2063_v44  ;;  %v1405_v55 = vadd.f32 %v1404_v60, %v1356_v62  ;;  %1599 = vmatmul.bf16.gmra.mxu1 %v3358_v11  ;;  %v1965_v11 = vadd.f32 %v3479_v23, %v3464_v28 }
 0x1b1   : > { %1648 = vmatmul.bf16.gmra.mxu2 %v3360_v12  ;;  %1697 = vmatmul.bf16.gmra.mxu3 %v3362_v13 }
 0x1b2   : > { %v1962_v6 = vadd.f32 %v3487_v38, %v1405_v55  ;;  %v2029_v13 = vmax.f32 %v1965_v11, 0.0 }
 0x1b4   : > { %v2026_v22 = vmax.f32 %v1962_v6, 0.0  ;;  %v1453_v4 = vpop.f32.mrf.mxu2  ;;  %v1502_v33 = vpop.f32.mrf.mxu3 }
 0x1b5   : > { %v1357_v59 = vpop.f32.mrf.mxu0  ;;  %v3607_v3 = vadd.f32 %v1502_v33, %v1453_v4  ;;  %v1406_v25 = vpop.f32.mrf.mxu1 }
 0x1b6   : > { %v2065_v34 = vpack.c.bf16 %v2026_v22, %v2025_v18  ;;  %v1358_v24 = vadd.f32 %v1357_v59, %v3466_v29  ;;  %v3771_v18 = vld [vmem:[#allocation16_spill] sm:$0xff] }
 0x1b7   : > { %v3637_v22 = vperm.slane %v3771_v18, 2 }
 0x1b8   : > { %2097 = vst [vmem:[%s3502_s22 + $0xc0] sm:$0xff] %v2065_v34  ;;  %v1407_v12 = vadd.f32 %v1406_v25, %v1358_v24 }
 0x1ba   : > { %v1966_v58 = vadd.f32 %v3487_v38, %v1407_v12 }
 0x1bc   : > { %v2030_v26 = vmax.f32 %v1966_v58, 0.0  ;;  %v1455_v27 = vpop.f32.mrf.mxu2  ;;  %v1504_v8 = vpop.f32.mrf.mxu3 }
 0x1bd   : > { %v1360_v35 = vpop.f32.mrf.mxu0  ;;  %v3614_v7 = vadd.f32 %v1504_v8, %v1455_v27  ;;  %v1409_v29 = vpop.f32.mrf.mxu1 }
 0x1be   : > { %v2067_v17 = vpack.c.bf16 %v2030_v26, %v2029_v13  ;;  %v1361_v47 = vadd.f32 %v1360_v35, %v3474_v61 }
 0x1bf   : > { %1555 = vmatmul.bf16.gmra.mxu0 %v3766_v57 }
 0x1c0   : > { %2099 = vst [vmem:[%s3502_s22 + $0xd0] sm:$0xff] %v2067_v17  ;;  %v1410_v28 = vadd.f32 %v1409_v29, %v1361_v47  ;;  %1604 = vmatmul.bf16.gmra.mxu1 %v3767_v36 }
 0x1c1   : > { %1653 = vmatmul.bf16.gmra.mxu2 %v3768_v31  ;;  %1702 = vmatmul.bf16.gmra.mxu3 %v3766_v57 }
 0x1c2   : > { %v1970_v0 = vadd.f32 %v3487_v38, %v1410_v28 }
 0x1c4   : > { %v2034_v10 = vmax.f32 %v1970_v0, 0.0  ;;  %v1458_v61 = vpop.f32.mrf.mxu2  ;;  %v1507_v46 = vpop.f32.mrf.mxu3 }
 0x1c5   : > { %v1362_v2 = vpop.f32.mrf.mxu0  ;;  %v3625_v54 = vadd.f32 %v1507_v46, %v1458_v61  ;;  %v1411_v49 = vpop.f32.mrf.mxu1 }
 0x1c6   : > { %v2069_v51 = vpack.c.bf16 %v2034_v10, %v2033_v1  ;;  %v1363_v48 = vadd.f32 %v1362_v2, %v3769_v52 }
 0x1c8   : > { %2101 = vst [vmem:[%s3502_s22 + $0xe0] sm:$0xff] %v2069_v51  ;;  %v1412_v53 = vadd.f32 %v1411_v49, %v1363_v48 }
 0x1ca   : > { %v1974_v40 = vadd.f32 %v3487_v38, %v1412_v53  ;;  %v3640_v38 = vperm.slane %v3771_v18, 3 }
 0x1cc   : > { %v2038_v45 = vmax.f32 %v1974_v40, 0.0  ;;  %v1460_v42 = vpop.f32.mrf.mxu2  ;;  %v1509_v44 = vpop.f32.mrf.mxu3 }
 0x1cd   : > { %v1521_v62 = vpop.f32.mrf.mxu0  ;;  %v3632_v21 = vadd.f32 %v1509_v44, %v1460_v42  ;;  %v1570_v55 = vpop.f32.mrf.mxu1 }
 0x1ce   : > { %v2071_v60 = vpack.c.bf16 %v2038_v45, %v2037_v19  ;;  %v1522_v6 = vadd.f32 %v1521_v62, %v3497_v43 }
 0x1d0   : > { %2103 = vst [vmem:[%s3502_s22 + $0xf0] sm:$0xff] %v2071_v60  ;;  %v1915_v24 = vadd.f32 %v3637_v22, %v1522_v6 }
 0x1d2   : > { %v1979_v12 = vmax.f32 %v1915_v24, 0.0 }
 0x1d4   : > { %v1619_v23 = vpop.f32.mrf.mxu2  ;;  %v1668_v33 = vpop.f32.mrf.mxu3 }
 0x1d5   : > { %v1620_v4 = vadd.f32 %v1619_v23, %v1570_v55  ;;  %v1523_v59 = vpop.f32.mrf.mxu0  ;;  %v1572_v34 = vpop.f32.mrf.mxu1 }
 0x1d6   : > { %v1524_v43 = vadd.f32 %v1523_v59, %v3506_v15 }
 0x1d7   : > { %v1669_v25 = vadd.f32 %v1668_v33, %v1620_v4 }
 0x1d8   : > { %v1919_v47 = vadd.f32 %v3637_v22, %v1524_v43 }
 0x1d9   : > { %v1916_v11 = vadd.f32 %v3640_v38, %v1669_v25 }
 0x1da   : > { %v1983_v28 = vmax.f32 %v1919_v47, 0.0 }
 0x1db   : > { %v1980_v58 = vmax.f32 %v1916_v11, 0.0 }
 0x1dc   : > { %v1621_v13 = vpop.f32.mrf.mxu2  ;;  %v1670_v8 = vpop.f32.mrf.mxu3 }
 0x1dd   : > { %v2042_v26 = vpack.c.bf16 %v1980_v58, %v1979_v12  ;;  %v1622_v27 = vadd.f32 %v1621_v13, %v1572_v34  ;;  %v1526_v35 = vpop.f32.mrf.mxu0  ;;  %v1575_v17 = vpop.f32.mrf.mxu1 }
 0x1de   : > { %v1527_v36 = vadd.f32 %v1526_v35, %v3517_v56 }
 0x1df   : > { %2074 = vst [vmem:[%s3502_s22 + $0x8] sm:$0xff] %v2042_v26  ;;  %v1671_v29 = vadd.f32 %v1670_v8, %v1622_v27 }
 0x1e0   : > { %v1923_v46 = vadd.f32 %v3637_v22, %v1527_v36 }
 0x1e1   : > { %v1920_v37 = vadd.f32 %v3640_v38, %v1671_v29 }
 0x1e2   : > { %v1987_v52 = vmax.f32 %v1923_v46, 0.0 }
 0x1e3   : > { %v1984_v57 = vmax.f32 %v1920_v37, 0.0 }
 0x1e4   : > { %v1624_v31 = vpop.f32.mrf.mxu2  ;;  %v1673_v1 = vpop.f32.mrf.mxu3 }
 0x1e5   : > { %v2044_v0 = vpack.c.bf16 %v1984_v57, %v1983_v28  ;;  %v1625_v15 = vadd.f32 %v1624_v31, %v1575_v17  ;;  %v1528_v10 = vpop.f32.mrf.mxu0  ;;  %v1577_v61 = vpop.f32.mrf.mxu1 }
 0x1e6   : > { %v1529_v49 = vadd.f32 %v1528_v10, %v3524_v32 }
 0x1e7   : > { %2076 = vst [vmem:[%s3502_s22 + $0x18] sm:$0xff] %v2044_v0  ;;  %v1674_v2 = vadd.f32 %v1673_v1, %v1625_v15 }
 0x1e8   : > { %v1927_v45 = vadd.f32 %v3637_v22, %v1529_v49 }
 0x1e9   : > { %v1924_v51 = vadd.f32 %v3640_v38, %v1674_v2 }
 0x1ea   : > { %v1991_v62 = vmax.f32 %v1927_v45, 0.0 }
 0x1eb   : > { %v1988_v48 = vmax.f32 %v1924_v51, 0.0 }
 0x1ec   : > { %v1626_v50 = vpop.f32.mrf.mxu2  ;;  %v1675_v53 = vpop.f32.mrf.mxu3 }
 0x1ed   : > { %v2046_v63 = vpack.c.bf16 %v1988_v48, %v1987_v52  ;;  %v1627_v56 = vadd.f32 %v1626_v50, %v1577_v61  ;;  %v1531_v40 = vpop.f32.mrf.mxu0  ;;  %v1580_v19 = vpop.f32.mrf.mxu1 }
 0x1ee   : > { %v1532_v55 = vadd.f32 %v1531_v40, %v3535_v30 }
 0x1ef   : > { %2078 = vst [vmem:[%s3502_s22 + $0x28] sm:$0xff] %v2046_v63  ;;  %v1676_v42 = vadd.f32 %v1675_v53, %v1627_v56 }
 0x1f0   : > { %v1931_v59 = vadd.f32 %v3637_v22, %v1532_v55 }
 0x1f1   : > { %v1928_v44 = vadd.f32 %v3640_v38, %v1676_v42 }
 0x1f2   : > { %v1995_v25 = vmax.f32 %v1931_v59, 0.0 }
 0x1f3   : > { %v1992_v60 = vmax.f32 %v1928_v44, 0.0 }
 0x1f4   : > { %v1629_v6 = vpop.f32.mrf.mxu2  ;;  %v1678_v23 = vpop.f32.mrf.mxu3 }
 0x1f5   : > { %v2048_v18 = vpack.c.bf16 %v1992_v60, %v1991_v62  ;;  %v1630_v32 = vadd.f32 %v1629_v6, %v1580_v19  ;;  %v1533_v4 = vpop.f32.mrf.mxu0  ;;  %v1582_v33 = vpop.f32.mrf.mxu1 }
 0x1f6   : > { %v1534_v12 = vadd.f32 %v1533_v4, %v3542_v39 }
 0x1f7   : > { %2080 = vst [vmem:[%s3502_s22 + $0x38] sm:$0xff] %v2048_v18  ;;  %v1679_v34 = vadd.f32 %v1678_v23, %v1630_v32 }
 0x1f8   : > { %v1935_v8 = vadd.f32 %v3637_v22, %v1534_v12 }
 0x1f9   : > { %v1932_v24 = vadd.f32 %v3640_v38, %v1679_v34 }
 0x1fa   : > { %v1999_v47 = vmax.f32 %v1935_v8, 0.0 }
 0x1fb   : > { %v1996_v11 = vmax.f32 %v1932_v24, 0.0 }
 0x1fc   : > { %v1631_v58 = vpop.f32.mrf.mxu2  ;;  %v1680_v13 = vpop.f32.mrf.mxu3 }
 0x1fd   : > { %v2050_v43 = vpack.c.bf16 %v1996_v11, %v1995_v25  ;;  %v1632_v30 = vadd.f32 %v1631_v58, %v1582_v33  ;;  %v1536_v26 = vpop.f32.mrf.mxu0  ;;  %v1585_v27 = vpop.f32.mrf.mxu1 }
 0x1fe   : > { %v1537_v37 = vadd.f32 %v1536_v26, %v3553_v16 }
 0x1ff   : > { %2082 = vst [vmem:[%s3502_s22 + $0x48] sm:$0xff] %v2050_v43  ;;  %v1681_v35 = vadd.f32 %v1680_v13, %v1632_v30 }
 0x200   : > { %v1939_v15 = vadd.f32 %v3637_v22, %v1537_v37 }
 0x201   : > { %v1936_v17 = vadd.f32 %v3640_v38, %v1681_v35 }
 0x202   : > { %v2003_v61 = vmax.f32 %v1939_v15, 0.0 }
 0x203   : > { %v2000_v29 = vmax.f32 %v1936_v17, 0.0 }
 0x204   : > { %v1634_v28 = vpop.f32.mrf.mxu2  ;;  %v1683_v36 = vpop.f32.mrf.mxu3 }
 0x205   : > { %v2052_v57 = vpack.c.bf16 %v2000_v29, %v1999_v47  ;;  %v1635_v39 = vadd.f32 %v1634_v28, %v1585_v27  ;;  %v1538_v31 = vpop.f32.mrf.mxu0  ;;  %v1587_v0 = vpop.f32.mrf.mxu1 }
 0x206   : > { %v1539_v2 = vadd.f32 %v1538_v31, %v3560_v41 }
 0x207   : > { %2084 = vst [vmem:[%s3502_s22 + $0x58] sm:$0xff] %v2052_v57  ;;  %v1684_v1 = vadd.f32 %v1683_v36, %v1635_v39 }
 0x208   : > { %v1943_v63 = vadd.f32 %v3637_v22, %v1539_v2 }
 0x209   : > { %v1940_v10 = vadd.f32 %v3640_v38, %v1684_v1 }
 0x20a   : > { %v2007_v40 = vmax.f32 %v1943_v63, 0.0 }
 0x20b   : > { %v2004_v46 = vmax.f32 %v1940_v10, 0.0 }
 0x20c   : > { %v1636_v51 = vpop.f32.mrf.mxu2  ;;  %v1685_v48 = vpop.f32.mrf.mxu3 }
 0x20d   : > { %v2054_v52 = vpack.c.bf16 %v2004_v46, %v2003_v61  ;;  %v1637_v16 = vadd.f32 %v1636_v51, %v1587_v0  ;;  %v1541_v49 = vpop.f32.mrf.mxu0  ;;  %v1590_v50 = vpop.f32.mrf.mxu1 }
 0x20e   : > { %v1542_v45 = vadd.f32 %v1541_v49, %v3571_v5 }
 0x20f   : > { %2086 = vst [vmem:[%s3502_s22 + $0x68] sm:$0xff] %v2054_v52  ;;  %v1686_v56 = vadd.f32 %v1685_v48, %v1637_v16 }
 0x210   : > { %v1947_v6 = vadd.f32 %v3637_v22, %v1542_v45 }
 0x211   : > { %v1944_v53 = vadd.f32 %v3640_v38, %v1686_v56 }
 0x212   : > { %v2011_v23 = vmax.f32 %v1947_v6, 0.0 }
 0x213   : > { %v2008_v19 = vmax.f32 %v1944_v53, 0.0 }
 0x214   : > { %v1639_v42 = vpop.f32.mrf.mxu2  ;;  %v1688_v62 = vpop.f32.mrf.mxu3 }
 0x215   : > { %v2056_v44 = vpack.c.bf16 %v2008_v19, %v2007_v40  ;;  %v1640_v41 = vadd.f32 %v1639_v42, %v1590_v50  ;;  %v1543_v60 = vpop.f32.mrf.mxu0  ;;  %v1592_v55 = vpop.f32.mrf.mxu1 }
 0x216   : > { %v1544_v33 = vadd.f32 %v1543_v60, %v3578_v14 }
 0x217   : > { %2088 = vst [vmem:[%s3502_s22 + $0x78] sm:$0xff] %v2056_v44  ;;  %v1689_v18 = vadd.f32 %v1688_v62, %v1640_v41 }
 0x218   : > { %v1951_v12 = vadd.f32 %v3637_v22, %v1544_v33 }
 0x219   : > { %v1948_v32 = vadd.f32 %v3640_v38, %v1689_v18 }
 0x21a   : > { %v2015_v30 = vmax.f32 %v1951_v12, 0.0 }
 0x21b   : > { %v2012_v4 = vmax.f32 %v1948_v32, 0.0 }
 0x21c   : > { %v1641_v59 = vpop.f32.mrf.mxu2  ;;  %v1690_v24 = vpop.f32.mrf.mxu3 }
 0x21d   : > { %v2058_v34 = vpack.c.bf16 %v2012_v4, %v2011_v23  ;;  %v1642_v5 = vadd.f32 %v1641_v59, %v1592_v55  ;;  %v1546_v25 = vpop.f32.mrf.mxu0  ;;  %v1595_v11 = vpop.f32.mrf.mxu1 }
 0x21e   : > { %v1547_v26 = vadd.f32 %v1546_v25, %v3589_v9 }
 0x21f   : > { %2090 = vst [vmem:[%s3502_s22 + $0x88] sm:$0xff] %v2058_v34  ;;  %v1691_v58 = vadd.f32 %v1690_v24, %v1642_v5 }
 0x220   : > { %v1955_v29 = vadd.f32 %v3637_v22, %v1547_v26 }
 0x221   : > { %v1952_v43 = vadd.f32 %v3640_v38, %v1691_v58 }
 0x222   : > { %v2019_v57 = vmax.f32 %v1955_v29, 0.0 }
 0x223   : > { %v2016_v13 = vmax.f32 %v1952_v43, 0.0 }
 0x224   : > { %v1644_v27 = vpop.f32.mrf.mxu2  ;;  %v1693_v35 = vpop.f32.mrf.mxu3 }
 0x225   : > { %v2060_v8 = vpack.c.bf16 %v2016_v13, %v2015_v30  ;;  %v1645_v14 = vadd.f32 %v1644_v27, %v1595_v11  ;;  %v1548_v17 = vpop.f32.mrf.mxu0  ;;  %v1597_v47 = vpop.f32.mrf.mxu1 }
 0x226   : > { %v1549_v36 = vadd.f32 %v1548_v17, %v3596_v20 }
 0x227   : > { %2092 = vst [vmem:[%s3502_s22 + $0x98] sm:$0xff] %v2060_v8  ;;  %v1694_v37 = vadd.f32 %v1693_v35, %v1645_v14 }
 0x228   : > { %v1959_v61 = vadd.f32 %v3637_v22, %v1549_v36 }
 0x229   : > { %v1956_v28 = vadd.f32 %v3640_v38, %v1694_v37 }
 0x22a   : > { %v2023_v51 = vmax.f32 %v1959_v61, 0.0 }
 0x22b   : > { %v2020_v39 = vmax.f32 %v1956_v28, 0.0 }
 0x22c   : > { %v1646_v31 = vpop.f32.mrf.mxu2  ;;  %v1695_v15 = vpop.f32.mrf.mxu3 }
 0x22d   : > { %v2062_v0 = vpack.c.bf16 %v2020_v39, %v2019_v57  ;;  %v1647_v9 = vadd.f32 %v1646_v31, %v1597_v47  ;;  %v1551_v1 = vpop.f32.mrf.mxu0  ;;  %v1600_v10 = vpop.f32.mrf.mxu1 }
 0x22e   : > { %v1552_v16 = vadd.f32 %v1551_v1, %v3607_v3 }
 0x22f   : > { %2094 = vst [vmem:[%s3502_s22 + $0xa8] sm:$0xff] %v2062_v0  ;;  %v1696_v46 = vadd.f32 %v1695_v15, %v1647_v9 }
 0x230   : > { %v1963_v56 = vadd.f32 %v3637_v22, %v1552_v16 }
 0x231   : > { %v1960_v2 = vadd.f32 %v3640_v38, %v1696_v46 }
 0x232   : > { %v2027_v45 = vmax.f32 %v1963_v56, 0.0 }
 0x233   : > { %v2024_v52 = vmax.f32 %v1960_v2, 0.0 }
 0x234   : > { %v1649_v48 = vpop.f32.mrf.mxu2  ;;  %v1698_v50 = vpop.f32.mrf.mxu3 }
 0x235   : > { %v2064_v49 = vpack.c.bf16 %v2024_v52, %v2023_v51  ;;  %v1650_v20 = vadd.f32 %v1649_v48, %v1600_v10  ;;  %v1553_v63 = vpop.f32.mrf.mxu0  ;;  %v1602_v40 = vpop.f32.mrf.mxu1 }
 0x236   : > { %v1554_v44 = vadd.f32 %v1553_v63, %v3614_v7 }
 0x237   : > { %2096 = vst [vmem:[%s3502_s22 + $0xb8] sm:$0xff] %v2064_v49  ;;  %v1699_v53 = vadd.f32 %v1698_v50, %v1650_v20 }
 0x238   : > { %v1967_v6 = vadd.f32 %v3637_v22, %v1554_v44 }
 0x239   : > { %v1964_v19 = vadd.f32 %v3640_v38, %v1699_v53 }
 0x23a   : > { %v2031_v4 = vmax.f32 %v1967_v6, 0.0 }
 0x23b   : > { %v2028_v42 = vmax.f32 %v1964_v19, 0.0 }
 0x23c   : > { %v1651_v41 = vpop.f32.mrf.mxu2  ;;  %v1700_v60 = vpop.f32.mrf.mxu3 }
 0x23d   : > { %v2066_v62 = vpack.c.bf16 %v2028_v42, %v2027_v45  ;;  %v1652_v3 = vadd.f32 %v1651_v41, %v1602_v40  ;;  %v1556_v55 = vpop.f32.mrf.mxu0  ;;  %v1605_v23 = vpop.f32.mrf.mxu1 }
 0x23e   : > { %v1557_v59 = vadd.f32 %v1556_v55, %v3625_v54 }
 0x23f   : > { %2098 = vst [vmem:[%s3502_s22 + $0xc8] sm:$0xff] %v2066_v62  ;;  %v1701_v18 = vadd.f32 %v1700_v60, %v1652_v3 }
 0x240   : > { %v1971_v25 = vadd.f32 %v3637_v22, %v1557_v59 }
 0x241   : > { %v1968_v32 = vadd.f32 %v3640_v38, %v1701_v18 }
 0x242   : > { %v2035_v43 = vmax.f32 %v1971_v25, 0.0 }
 0x243   : > { %v2032_v33 = vmax.f32 %v1968_v32, 0.0 }
 0x244   : > { %v1654_v34 = vpop.f32.mrf.mxu2  ;;  %v1703_v24 = vpop.f32.mrf.mxu3 }
 0x245   : > { %v2068_v7 = vpack.c.bf16 %v2032_v33, %v2031_v4  ;;  %v1655_v5 = vadd.f32 %v1654_v34, %v1605_v23  ;;  %v1558_v12 = vpop.f32.mrf.mxu0  ;;  %v1607_v26 = vpop.f32.mrf.mxu1 }
 0x246   : > { %v1559_v13 = vadd.f32 %v1558_v12, %v3632_v21 }
 0x247   : > { %2100 = vst [vmem:[%s3502_s22 + $0xd8] sm:$0xff] %v2068_v7  ;;  %v1704_v11 = vadd.f32 %v1703_v24, %v1655_v5 }
 0x248   : > { %v1975_v35 = vadd.f32 %v3637_v22, %v1559_v13 }
 0x249   : > { %v1972_v58 = vadd.f32 %v3640_v38, %v1704_v11 }
 0x24a   : > { %v2039_v21 = vmax.f32 %v1975_v35, 0.0 }
 0x24b   : > { %v2036_v30 = vmax.f32 %v1972_v58, 0.0 }
 0x24c   : > { %v1656_v54 = vpop.f32.mrf.mxu2  ;;  %v1705_v14 = vpop.f32.mrf.mxu3 }
 0x24d   : > { %v2070_v27 = vpack.c.bf16 %v2036_v30, %v2035_v43  ;;  %v1657_v8 = vadd.f32 %v1656_v54, %v1607_v26 }
 0x24f   : > { %2102 = vst [vmem:[%s3502_s22 + $0xe8] sm:$0xff] %v2070_v27  ;;  %v1706_v17 = vadd.f32 %v1705_v14, %v1657_v8 }
 0x251   : > { %v1976_v47 = vadd.f32 %v3640_v38, %v1706_v17 }
 0x253   : > { %v2040_v29 = vmax.f32 %v1976_v47, 0.0 }
 0x255   : > { %v2072_v37 = vpack.c.bf16 %v2040_v29, %v2039_v21 }
 0x257   : > { %2104 = vst [vmem:[%s3502_s22 + $0xf8] sm:$0xff] %v2072_v37 }
 0x258   : > { %3057 = shalt.err (!%p3054_p0)
}
 0x259   : > { %s3124_s11 = smov 256   ;;  %s3125_s29 = smov 16  }
 0x25a   : > { %2861 = dma.vmem_to_hbm [thread:$0]  (%p3225_p7), %s2120_s4, 4096, %s2122_s15, %s2106_s5, %s3124_s11, %s3124_s11, %s3125_s29  }
 0x25b PF: > { %s2136_s20 = sand.u32 1, %s3096_s12   ;;  %p2875_p3 = pnand %p2232_p11, %p3195_p6 }
 0x25c   : > { %s2137_s22 = scalar_lea.sflag [#allocation5], %s2136_s20 }
 0x25d   : > { %p2876_p5 = pneg %p2875_p3 }
 0x25f   : > { %3091 = dma.done.wait (%p2876_p5), %s2137_s22, 4096  }
 0x260   : > { %3093 = vsyncadd (%p2876_p5), %s2137_s22, 4294963200  ;;  %s20_s17 = sadd.s32 1, %s3116_s17   ;;  %s3772_s12 = smov %s3100_s13 }
 0x261   : > { %p17_p9 = scmp.ge.s32.totalorder %s20_s17, 4   ;;  %s3773_s13 = smov %s3104_s14 }
 0x262   : > { %s3774_s14 = smov %s3233_s26  ;;  %s3775_s15 = smov %s3112_s16 }
 0x263   : > { %s3776_s16 = smov %s3778_s10  ;;  %19 = sbr.rel (!%p17_p9) target bundleno = 7 (0x7), region = 94 }
 0x268   :  { %2143 = vsyncpa [#allocation4], 1 }
 0x269   :  { %2145 = vsyncpa [#allocation4 + $0x1], 1 }
 0x26a   :  { %2146 = vsyncpa [#allocation7], 1 }
 0x26b   :  { %2147 = vsyncpa [#allocation5], 1 }
 0x26c   :  { %2149 = vsyncpa [#allocation5 + $0x1], 1 }

</bundles_post_ra>
